<compile_context>
chip_gen: v6e
topology: v6e:2x2x1
jax: 0.10.0
libtpu: 0.0.40
codegen_flags: <defaults>
</compile_context>

<pallas_src>
import jax
import jax.numpy as jnp
from jax.experimental import pallas as pl
from jax.experimental.pallas import tpu as pltpu


def _round_up(x, m):
    return ((x + m - 1) // m) * m


def _cdiv(a, b):
    return -(-a // b)


def _tpu_vmem_bytes():
    """Physical VMEM per core; falls back to a conservative (v7x-sized) value."""
    try:
        info = pltpu.get_tpu_info()
        v = getattr(info, "vmem_capacity_bytes", None)
        if v:
            return int(v)
    except Exception:
        pass
    return 64 << 20


def _inscls_kernel(x_ref, w1_ref, b1_ref, w2_ref, b2_ref, w3_ref, b3_ref, o_ref):
    # grad_reverse is the identity in the forward pass.
    x = x_ref[...]

    # dc_ip1 + ReLU (f32 accumulation on the MXU).
    h1 = jnp.dot(x, w1_ref[...], preferred_element_type=jnp.float32)
    h1 = jnp.maximum(h1 + b1_ref[...].astype(jnp.float32), 0.0)

    # dc_ip2 (no ReLU in forward).  Cast back to the weight dtype so bf16
    # weights keep the MXU-native path; a no-op for f32 weights.
    h2 = jnp.dot(h1.astype(w2_ref.dtype), w2_ref[...],
                 preferred_element_type=jnp.float32)
    h2 = h2 + b2_ref[...].astype(jnp.float32)

    # classifier + sigmoid (exp runs on the EUP slot; columns are padded to
    # 128 lanes, padding is sliced off in the wrapper).
    logits = jnp.dot(h2.astype(w3_ref.dtype), w3_ref[...],
                     preferred_element_type=jnp.float32)
    logits = logits + b3_ref[...].astype(jnp.float32)
    o_ref[...] = jax.nn.sigmoid(logits).astype(o_ref.dtype)


def inscls_prime_forward(x, params, *, tb=None,
                         compute_dtype=jnp.bfloat16,
                         out_dtype=jnp.float32):
    """Forward pass of _InsClsPrime.

    x: (B, 1024).
    params: (w1, b1, w2, b2, w3, b3) with shapes
        (1024, 512), (1, 512), (512, 256), (1, 256), (256, num_cls), (1, num_cls)
    Returns: (B, num_cls) `out_dtype` sigmoid probabilities.
    """
    w1, b1, w2, b2, w3, b3 = params
    B, d_in = x.shape
    assert d_in == 1024
    num_cls = w3.shape[1]

    # Normalize dtypes in one place: mixed bf16/f32 inputs would silently fall
    # back to the emulated f32 MXU path.  Biases stay f32 (VPU add only).
    x = x.astype(compute_dtype)
    w1, w2, w3 = (w.astype(compute_dtype) for w in (w1, w2, w3))
    b1, b2, b3 = (b.astype(jnp.float32) for b in (b1, b2, b3))

    # Lane-dense output: pad the classifier to a multiple of 128 columns.
    # Deliberately NOT padded wider (e.g. 256) — the classifier is ~3% of the
    # FLOPs and wider padding only adds output HBM traffic.
    n_out = _round_up(num_cls, 128)
    if n_out != num_cls:
        w3 = jnp.pad(w3, ((0, 0), (0, n_out - num_cls)))
        b3 = jnp.pad(b3, ((0, 0), (0, n_out - num_cls)))

    # Generation-aware tile size / VMEM budget.
    vmem_bytes = _tpu_vmem_bytes()
    big_vmem = vmem_bytes >= (100 << 20)          # v5e/v6e: 128 MiB physical
    if tb is None:
        if compute_dtype == jnp.bfloat16:
            tb = 4096 if big_vmem else 2048
        else:
            tb = 2048 if big_vmem else 1024
    vmem_limit = (64 << 20) if big_vmem else (48 << 20)

    sublane = 16 if compute_dtype == jnp.bfloat16 else 8

    # Balanced batch tiling: pick the step count first, then size the tile so
    # padding is capped at < one sublane group of rows (never a whole tile).
    num_steps = max(1, _cdiv(B, tb))
    # Small-VMEM generation (v7x) has 2 TensorCores/chip: give the "parallel"
    # batch axis at least 2 steps so both cores get work for medium batches.
    if (not big_vmem) and num_steps < 2 and B >= 128:
        num_steps = 2
    tb_eff = _round_up(_cdiv(B, num_steps), sublane)
    b_pad = num_steps * tb_eff
    if b_pad != B:
        x = jnp.pad(x, ((0, b_pad - B), (0, 0)))
    grid = (num_steps,)

    # Weights/biases never change across grid steps -> single-buffer them.
    def const_spec(shape):
        return pl.BlockSpec(shape, lambda i: (0, 0),
                            pipeline_mode=pl.Buffered(buffer_count=1))

    out = pl.pallas_call(
        _inscls_kernel,
        out_shape=jax.ShapeDtypeStruct((b_pad, n_out), compute_dtype),
        grid_spec=pltpu.PrefetchScalarGridSpec(
            num_scalar_prefetch=0,
            grid=grid,
            in_specs=[
                pl.BlockSpec((tb_eff, 1024), lambda i: (i, 0)),  # x tile over batch
                const_spec((1024, 512)),                         # W1
                const_spec((1, 512)),                            # b1
                const_spec((512, 256)),                          # W2
                const_spec((1, 256)),                            # b2
                const_spec((256, n_out)),                        # W3 (lane padded)
                const_spec((1, n_out)),                          # b3 (lane padded)
            ],
            out_specs=pl.BlockSpec((tb_eff, n_out), lambda i: (i, 0)),
        ),
        compiler_params=pltpu.CompilerParams(
            # batch axis is embarrassingly parallel -> megacore/TC sharding
            dimension_semantics=("parallel",),
            vmem_limit_bytes=vmem_limit,
        ),
    )(x, w1, b1, w2, b2, w3, b3)

    # Slice on the narrow compute-dtype buffer, then cast only the payload.
    return out[:B, :num_cls].astype(out_dtype)


def init_params(key, num_cls):
    """Deterministic PyTorch-Linear-style init: U(-1/sqrt(fan_in), 1/sqrt(fan_in))."""
    def linear(key, fan_in, fan_out):
        kw, kb = jax.random.split(key)
        bound = 1.0 / (fan_in ** 0.5)
        # stored as (in, out) so forward is x @ W + b
        w = jax.random.uniform(kw, (fan_in, fan_out), jnp.float32, -bound, bound)
        b = jax.random.uniform(kb, (1, fan_out), jnp.float32, -bound, bound)
        return w, b

    k1, k2, k3 = jax.random.split(key, 3)
    w1, b1 = linear(k1, 1024, 512)
    w2, b2 = linear(k2, 512, 256)
    w3, b3 = linear(k3, 256, num_cls)
    return (w1, b1, w2, b2, w3, b3)


def _reference(x, params):
    w1, b1, w2, b2, w3, b3 = params
    h1 = jnp.maximum(x @ w1 + b1, 0.0)
    h2 = h1 @ w2 + b2
    return jax.nn.sigmoid(h2 @ w3 + b3)


if __name__ == "__main__":
    num_cls = 8

    key = jax.random.PRNGKey(0)
    kx, kp, kx2 = jax.random.split(key, 3)
    params = init_params(kp, num_cls)

    # 1) Small batch, exact f32 compute path (tight tolerance vs reference).
    x = jax.random.normal(kx, (16, 1024), jnp.float32)
    out = jax.block_until_ready(
        inscls_prime_forward(x, params, compute_dtype=jnp.float32))
    ref = _reference(x, params)
    assert out.shape == (16, num_cls)
    assert jnp.allclose(out, ref, atol=1e-5, rtol=1e-5), "f32 mismatch vs reference"

    # 2) Default bf16 compute path, small batch (single grid step).
    out_bf = jax.block_until_ready(inscls_prime_forward(x, params))
    assert out_bf.shape == (16, num_cls)
    assert out_bf.dtype == jnp.float32
    assert jnp.allclose(out_bf, ref, atol=3e-2, rtol=0), "bf16 mismatch vs reference"

    # 3) Ragged batch + multi-step grid, f32 compute (tight check of the
    #    balanced padding / tiling logic: 300 rows -> 3 steps of 104, pad 12).
    x2 = jax.random.normal(kx2, (300, 1024), jnp.float32)
    out2 = jax.block_until_ready(
        inscls_prime_forward(x2, params, tb=128, compute_dtype=jnp.float32))
    ref2 = _reference(x2, params)
    assert out2.shape == (300, num_cls)
    assert jnp.allclose(out2, ref2, atol=1e-5, rtol=1e-5), "ragged f32 mismatch"

    # 4) Ragged batch + multi-step grid on the default bf16 path
    #    (300 rows -> 3 steps of 112 bf16-sublane-aligned rows, pad 36).
    out3 = jax.block_until_ready(inscls_prime_forward(x2, params, tb=128))
    assert out3.shape == (300, num_cls)
    assert jnp.allclose(out3, ref2, atol=3e-2, rtol=0), "ragged bf16 mismatch"

    print("KERNEL_OK")
</pallas_src>

<mosaic_0001>
module attributes {stable_mosaic.version = 11 : i64} {
  func.func @_inscls_kernel(%arg0: i32, %arg1: memref<16x1024xf32, #tpu.memory_space<vmem>>, %arg2: memref<1024x512xf32, #tpu.memory_space<vmem>>, %arg3: memref<1x512xf32, #tpu.memory_space<vmem>>, %arg4: memref<512x256xf32, #tpu.memory_space<vmem>>, %arg5: memref<1x256xf32, #tpu.memory_space<vmem>>, %arg6: memref<256x128xf32, #tpu.memory_space<vmem>>, %arg7: memref<1x128xf32, #tpu.memory_space<vmem>>, %arg8: memref<16x128xf32, #tpu.memory_space<vmem>>) attributes {dimension_semantics = [#tpu.dimension_semantics<parallel>], iteration_bounds = array<i64: 1>, scalar_prefetch = 0 : i64, scratch_operands = 0 : i64, tpu.core_type = #tpu.core_type<tc>, window_params = [{transform_indices = @transform_0, window_bounds = array<i64: 16, 1024>}, {pipeline_mode = #tpu.pipeline_mode<synchronous>, transform_indices = @transform_1, window_bounds = array<i64: 1024, 512>}, {pipeline_mode = #tpu.pipeline_mode<synchronous>, transform_indices = @transform_2, window_bounds = array<i64: 1, 512>}, {pipeline_mode = #tpu.pipeline_mode<synchronous>, transform_indices = @transform_3, window_bounds = array<i64: 512, 256>}, {pipeline_mode = #tpu.pipeline_mode<synchronous>, transform_indices = @transform_4, window_bounds = array<i64: 1, 256>}, {pipeline_mode = #tpu.pipeline_mode<synchronous>, transform_indices = @transform_5, window_bounds = array<i64: 256, 128>}, {pipeline_mode = #tpu.pipeline_mode<synchronous>, transform_indices = @transform_6, window_bounds = array<i64: 1, 128>}, {transform_indices = @transform_7, window_bounds = array<i64: 16, 128>}]} {
    %c0 = arith.constant 0 : index
    %c0_0 = arith.constant 0 : index
    %0 = vector.load %arg1[%c0, %c0_0] : memref<16x1024xf32, #tpu.memory_space<vmem>>, vector<16x1024xf32>
    %c0_1 = arith.constant 0 : index
    %c0_2 = arith.constant 0 : index
    %1 = vector.load %arg2[%c0_1, %c0_2] : memref<1024x512xf32, #tpu.memory_space<vmem>>, vector<1024x512xf32>
    %cst = arith.constant dense<0.000000e+00> : vector<16x512xf32>
    %2 = tpu.matmul %0, %1, %cst {dimension_numbers = #tpu.dot_dimension_numbers<[1], [0], [0], [1], [0, 0, 1, 1], [], []>} : vector<16x1024xf32>, vector<1024x512xf32>, vector<16x512xf32> -> vector<16x512xf32>
    %c0_3 = arith.constant 0 : index
    %c0_4 = arith.constant 0 : index
    %3 = vector.load %arg3[%c0_3, %c0_4] : memref<1x512xf32, #tpu.memory_space<vmem>>, vector<1x512xf32>
    %4 = vector.broadcast %3 : vector<1x512xf32> to vector<16x512xf32>
    %5 = arith.addf %2, %4 : vector<16x512xf32>
    %cst_5 = arith.constant 0.000000e+00 : f32
    %6 = vector.broadcast %cst_5 : f32 to vector<16x512xf32>
    %7 = arith.maximumf %5, %6 : vector<16x512xf32>
    %c0_6 = arith.constant 0 : index
    %c0_7 = arith.constant 0 : index
    %8 = vector.load %arg4[%c0_6, %c0_7] : memref<512x256xf32, #tpu.memory_space<vmem>>, vector<512x256xf32>
    %cst_8 = arith.constant dense<0.000000e+00> : vector<16x256xf32>
    %9 = tpu.matmul %7, %8, %cst_8 {dimension_numbers = #tpu.dot_dimension_numbers<[1], [0], [0], [1], [0, 0, 1, 1], [], []>} : vector<16x512xf32>, vector<512x256xf32>, vector<16x256xf32> -> vector<16x256xf32>
    %c0_9 = arith.constant 0 : index
    %c0_10 = arith.constant 0 : index
    %10 = vector.load %arg5[%c0_9, %c0_10] : memref<1x256xf32, #tpu.memory_space<vmem>>, vector<1x256xf32>
    %11 = vector.broadcast %10 : vector<1x256xf32> to vector<16x256xf32>
    %12 = arith.addf %9, %11 : vector<16x256xf32>
    %c0_11 = arith.constant 0 : index
    %c0_12 = arith.constant 0 : index
    %13 = vector.load %arg6[%c0_11, %c0_12] : memref<256x128xf32, #tpu.memory_space<vmem>>, vector<256x128xf32>
    %cst_13 = arith.constant dense<0.000000e+00> : vector<16x128xf32>
    %14 = tpu.matmul %12, %13, %cst_13 {dimension_numbers = #tpu.dot_dimension_numbers<[1], [0], [0], [1], [0, 0, 1, 1], [], []>} : vector<16x256xf32>, vector<256x128xf32>, vector<16x128xf32> -> vector<16x128xf32>
    %c0_14 = arith.constant 0 : index
    %c0_15 = arith.constant 0 : index
    %15 = vector.load %arg7[%c0_14, %c0_15] : memref<1x128xf32, #tpu.memory_space<vmem>>, vector<1x128xf32>
    %16 = vector.broadcast %15 : vector<1x128xf32> to vector<16x128xf32>
    %17 = arith.addf %14, %16 : vector<16x128xf32>
    %18 = arith.negf %17 : vector<16x128xf32>
    %19 = math.exp %18 : vector<16x128xf32>
    %cst_16 = arith.constant 1.000000e+00 : f32
    %20 = vector.broadcast %cst_16 : f32 to vector<16x128xf32>
    %21 = arith.addf %20, %19 : vector<16x128xf32>
    %22 = arith.divf %20, %21 : vector<16x128xf32>
    %c0_17 = arith.constant 0 : index
    %c0_18 = arith.constant 0 : index
    %23 = vector.load %arg8[%c0_17, %c0_18] : memref<16x128xf32, #tpu.memory_space<vmem>>, vector<16x128xf32>
    tpu.vector_store %arg8[%c0_17, %c0_18], %22 {strides = array<i32>} : memref<16x128xf32, #tpu.memory_space<vmem>>, vector<16x128xf32>,
    return
  }
  func.func @transform_0(%arg0: i32) -> (i32, i32) {
    %c0_i32 = arith.constant 0 : i32
    %c0_i32_0 = arith.constant 0 : i32
    return %arg0, %c0_i32 : i32, i32
  }
  func.func @transform_1(%arg0: i32) -> (i32, i32) {
    %c0_i32 = arith.constant 0 : i32
    %c0_i32_0 = arith.constant 0 : i32
    %c0_i32_1 = arith.constant 0 : i32
    return %c0_i32, %c0_i32_0 : i32, i32
  }
  func.func @transform_2(%arg0: i32) -> (i32, i32) {
    %c0_i32 = arith.constant 0 : i32
    %c0_i32_0 = arith.constant 0 : i32
    %c0_i32_1 = arith.constant 0 : i32
    return %c0_i32, %c0_i32_0 : i32, i32
  }
  func.func @transform_3(%arg0: i32) -> (i32, i32) {
    %c0_i32 = arith.constant 0 : i32
    %c0_i32_0 = arith.constant 0 : i32
    %c0_i32_1 = arith.constant 0 : i32
    return %c0_i32, %c0_i32_0 : i32, i32
  }
  func.func @transform_4(%arg0: i32) -> (i32, i32) {
    %c0_i32 = arith.constant 0 : i32
    %c0_i32_0 = arith.constant 0 : i32
    %c0_i32_1 = arith.constant 0 : i32
    return %c0_i32, %c0_i32_0 : i32, i32
  }
  func.func @transform_5(%arg0: i32) -> (i32, i32) {
    %c0_i32 = arith.constant 0 : i32
    %c0_i32_0 = arith.constant 0 : i32
    %c0_i32_1 = arith.constant 0 : i32
    return %c0_i32, %c0_i32_0 : i32, i32
  }
  func.func @transform_6(%arg0: i32) -> (i32, i32) {
    %c0_i32 = arith.constant 0 : i32
    %c0_i32_0 = arith.constant 0 : i32
    %c0_i32_1 = arith.constant 0 : i32
    return %c0_i32, %c0_i32_0 : i32, i32
  }
  func.func @transform_7(%arg0: i32) -> (i32, i32) {
    %c0_i32 = arith.constant 0 : i32
    %c0_i32_0 = arith.constant 0 : i32
    return %arg0, %c0_i32 : i32, i32
  }
}

</mosaic_0001>

<bundles_post_ra>
// kernel: tpu_custom_call.1
= control target key start
LH: loop header
LB: loop body
LE: loop exit
PB: predicated region body
PF: predicated region fallthrough
CT: control target
= control target key end

     0   :  { %12 = vsyncpa [#allocation3], 0  ;;  %s2221_s0 = inlined_call_operand.hbm [shape: f32[16,1024], index: 0, kind: input, shape index: {}]   ;;  %s2222_s1 = inlined_call_operand.hbm [shape: f32[1024,512], index: 1, kind: input, shape index: {}]   ;;  %s2223_s2 = inlined_call_operand.hbm [shape: f32[1,512], index: 2, kind: input, shape index: {}]   ;;  %s2224_s3 = inlined_call_operand.hbm [shape: f32[512,256], index: 3, kind: input, shape index: {}]   ;;  %s2225_s4 = inlined_call_operand.hbm [shape: f32[1,256], index: 4, kind: input, shape index: {}]   ;;  %s2226_s5 = inlined_call_operand.hbm [shape: f32[256,128], index: 5, kind: input, shape index: {}]   ;;  %s2227_s6 = inlined_call_operand.hbm [shape: f32[1,128], index: 6, kind: input, shape index: {}]   ;;  %s2228_s7 = inlined_call_operand.hbm [shape: f32[16,128], index: 7, kind: output, shape index: {}]  }
   0x1   :  { %13 = vsyncpa [#allocation6], 0 }
   0x2   :  { %14 = vsyncpa [#allocation9], 0 }
   0x3   :  { %15 = vsyncpa [#allocation12], 0 }
   0x4   :  { %16 = vsyncpa [#allocation4], 0  ;;  %s2015_s24 = smov [#allocation5]  }
   0x5   :  { %s34_s25 = sshll.u32 %s2015_s24, 4  ;;  %s35_s25 = int_to_ptr.vmem [resolvable:$true] %s34_s25 }
   0x6   :  { %s1853_s26 = scalar_lea.vmem %s35_s25, 65536  ;;  %p1858_p1 = scmp.lt.s32.totalorder %s35_s25, %s35_s25 }
   0x7   :  { %p1854_p0 = scmp.ne.s32.totalorder %s35_s25, %s1853_s26  ;;  %p1859_p2 = scmp.lt.s32.totalorder %s1853_s26, %s1853_s26 }
   0x9   :  { %p1860_p3 = por %p1859_p2, %p1858_p1 }
   0xb   :  { %p1861_p4 = pnand %p1860_p3, %p1854_p0 }
   0xd   :  { %1864 = shalt.err (!%p1861_p4)
}
   0xe   :  { %s2016_s27 = smov 512   ;;  %s2017_s28 = smov 32  }
   0xf   :  { %40 = dma.hbm_to_vmem [thread:$0]  %s2222_s1, 65536, %s35_s25, [#allocation6], %s2016_s27, %s2016_s27, %s2017_s28  }
  0x10   :  { %s2018_s8 = smov [#allocation8]  }
  0x11   :  { %s56_s9 = sshll.u32 %s2018_s8, 4  ;;  %s57_s9 = int_to_ptr.vmem [resolvable:$true] %s56_s9 }
  0x12   :  { %s1873_s10 = scalar_lea.vmem %s57_s9, 16384  ;;  %p1878_p6 = scmp.lt.s32.totalorder %s57_s9, %s57_s9 }
  0x13   :  { %p1874_p5 = scmp.ne.s32.totalorder %s57_s9, %s1873_s10  ;;  %p1879_p7 = scmp.lt.s32.totalorder %s1873_s10, %s1873_s10 }
  0x15   :  { %p1880_p8 = por %p1879_p7, %p1878_p6 }
  0x17   :  { %p1881_p9 = pnand %p1880_p8, %p1874_p5 }
  0x19   :  { %1884 = shalt.err (!%p1881_p9)
}
  0x1a   :  { %s2019_s11 = smov 256   ;;  %s2020_s12 = smov 16  }
  0x1b   :  { %62 = dma.hbm_to_vmem [thread:$0]  %s2224_s3, 16384, %s57_s9, [#allocation9], %s2019_s11, %s2019_s11, %s2020_s12  }
  0x1c   :  { %s2021_s15 = smov [#allocation11]  }
  0x1d   :  { %s78_s16 = sshll.u32 %s2021_s15, 4  ;;  %s79_s16 = int_to_ptr.vmem [resolvable:$true] %s78_s16 }
  0x1e   :  { %s1893_s1 = scalar_lea.vmem %s79_s16, 4096  ;;  %p1898_p11 = scmp.lt.s32.totalorder %s79_s16, %s79_s16 }
  0x1f   :  { %p1894_p10 = scmp.ne.s32.totalorder %s79_s16, %s1893_s1  ;;  %p1899_p12 = scmp.lt.s32.totalorder %s1893_s1, %s1893_s1 }
  0x21   :  { %p1900_p13 = por %p1899_p12, %p1898_p11 }
  0x23   :  { %p1901_p0 = pnand %p1900_p13, %p1894_p10 }
  0x25   :  { %1904 = shalt.err (!%p1901_p0)
}
  0x26   :  { %s2022_s17 = smov 128   ;;  %s2023_s18 = smov 8  }
  0x27   :  { %84 = dma.hbm_to_vmem [thread:$0]  %s2226_s5, 4096, %s79_s16, [#allocation12], %s2022_s17, %s2022_s17, %s2023_s18  }
  0x28   :  { %s2024_s3 = smov [#allocation2]  }
  0x29   :  { %s22_s21 = sshll.u32 %s2024_s3, 4  ;;  %s23_s21 = int_to_ptr.vmem [resolvable:$true] %s22_s21 }
  0x2a   :  { %s1913_s22 = scalar_lea.vmem %s23_s21, 2048  ;;  %p1918_p2 = scmp.lt.s32.totalorder %s23_s21, %s23_s21 }
  0x2b   :  { %p1914_p1 = scmp.ne.s32.totalorder %s23_s21, %s1913_s22  ;;  %p1919_p3 = scmp.lt.s32.totalorder %s1913_s22, %s1913_s22 }
  0x2d   :  { %p1920_p4 = por %p1919_p3, %p1918_p2 }
  0x2f   :  { %p1921_p5 = pnand %p1920_p4, %p1914_p1 }
  0x31   :  { %1924 = shalt.err (!%p1921_p5)
}
  0x32   :  { %s2025_s23 = smov 1024   ;;  %s2026_s24 = smov 64  }
  0x33   :  { %28 = dma.hbm_to_vmem [thread:$0]  %s2221_s0, 2048, %s23_s21, [#allocation3], %s2025_s23, %s2025_s23, %s2026_s24  }
  0x34   :  { %s2027_s27 = smov [#allocation7]   ;;  %s2028_s29 = smov [#allocation10]  }
  0x35   :  { %s47_s28 = sshll.u32 %s2027_s27, 4  ;;  %s69_s5 = sshll.u32 %s2028_s29, 4  ;;  %s48_s28 = int_to_ptr.vmem [resolvable:$true] %s47_s28  ;;  %s70_s5 = int_to_ptr.vmem [resolvable:$true] %s69_s5 }
  0x36   :  { %s1933_s30 = scalar_lea.vmem %s48_s28, 64  ;;  %p1938_p7 = scmp.lt.s32.totalorder %s48_s28, %s48_s28 }
  0x37   :  { %p1934_p6 = scmp.ne.s32.totalorder %s48_s28, %s1933_s30  ;;  %p1939_p8 = scmp.lt.s32.totalorder %s1933_s30, %s1933_s30 }
  0x39   :  { %p1940_p9 = por %p1939_p8, %p1938_p7 }
  0x3b   :  { %p1941_p10 = pnand %p1940_p9, %p1934_p6 }
  0x3d   :  { %1944 = shalt.err (!%p1941_p10)
}
  0x3e   :  { %50 = dma.hbm_to_vmem [thread:$0]  %s2223_s2, 64, %s48_s28, [#allocation6]  }
  0x3f   :  { %s1953_s10 = scalar_lea.vmem %s70_s5, 32  ;;  %p1958_p12 = scmp.lt.s32.totalorder %s70_s5, %s70_s5 }
  0x40   :  { %p1954_p11 = scmp.ne.s32.totalorder %s70_s5, %s1953_s10  ;;  %p1959_p13 = scmp.lt.s32.totalorder %s1953_s10, %s1953_s10 }
  0x42   :  { %p1960_p0 = por %p1959_p13, %p1958_p12 }
  0x44   :  { %p1961_p1 = pnand %p1960_p0, %p1954_p11 }
  0x46   :  { %1964 = shalt.err (!%p1961_p1)
}
  0x47   :  { %72 = dma.hbm_to_vmem [thread:$0]  %s2225_s4, 32, %s70_s5, [#allocation9]  }
  0x48   :  { %s2029_s12 = smov [#allocation13]  }
  0x49   :  { %s91_s13 = sshll.u32 %s2029_s12, 4  ;;  %s92_s13 = int_to_ptr.vmem [resolvable:$true] %s91_s13 }
  0x4a   :  { %s1973_s14 = scalar_lea.vmem %s92_s13, 16  ;;  %s1977_s15 = scalar_lea.vmem %s92_s13, 32 }
  0x4b   :  { %p1974_p2 = scmp.ne.s32.totalorder %s92_s13, %s1973_s14  ;;  %p1978_p3 = scmp.lt.s32.totalorder %s92_s13, %s92_s13 }
  0x4c   :  { %p1979_p4 = scmp.lt.s32.totalorder %s1977_s15, %s1973_s14 }
  0x4e   :  { %p1980_p5 = por %p1979_p4, %p1978_p3 }
  0x50   :  { %p1981_p6 = pnand %p1980_p5, %p1974_p2 }
  0x52   :  { %1984 = shalt.err (!%p1981_p6)
}
  0x53   :  { %94 = dma.hbm_to_vmem [thread:$0]  %s2227_s6, 16, %s92_s13, [#allocation12]  }
  0x54   :  { %2005 = dma.done.wait [#allocation3], 2048  }
  0x55   :  { %2006 = vsyncadd [#allocation3], 4294965248 }
  0x56   :  { %2007 = dma.done.wait [#allocation6], 65600  }
  0x57   :  { %2008 = vsyncadd [#allocation6], 4294901696 }
  0x58   :  { %2009 = dma.done.wait [#allocation9], 16416  }
  0x59   :  { %2010 = vsyncadd [#allocation9], 4294950880 }
  0x5a   :  { %2011 = dma.done.wait [#allocation12], 4112  }
  0x5b   :  { %2012 = vsyncadd [#allocation12], 4294963184  ;;  %v193_v0 = vld [vmem:[#allocation5 + $0x1e8] sm:$0xff]  ;;  %v192_v2 = vld [vmem:[#allocation5 + $0x1e0] sm:$0xff]  ;;  %s2030_s4 = smov [#allocation14]  }
  0x5c   :  { %v321_v1 = vld [vmem:[#allocation5 + $0x5e8] sm:$0xff]  ;;  %666 = vmatprep.subr.mxu0 %v193_v0  ;;  %v320_v3 = vld [vmem:[#allocation5 + $0x5e0] sm:$0xff]  ;;  %s1717_s6 = sshll.u32 %s2030_s4, 4  ;;  %s1718_s6 = int_to_ptr.vmem [resolvable:$true] %s1717_s6 }
  0x5d   :  { %743 = vmatprep.subr.mxu1 %v321_v1  ;;  %v189_v4 = vld [vmem:[#allocation5 + $0x1c8] sm:$0xff]  ;;  %667 = vmatpush1.msra.mxu0 %v192_v2  ;;  %v188_v6 = vld [vmem:[#allocation5 + $0x1c0] sm:$0xff]  ;;  %s1985_s1 = scalar_lea.vmem %s1718_s6, 256  ;;  %p1990_p8 = scmp.lt.s32.totalorder %s1718_s6, %s1718_s6 }
  0x5e   :  { %v317_v5 = vld [vmem:[#allocation5 + $0x5c8] sm:$0xff]  ;;  %744 = vmatpush1.msra.mxu1 %v320_v3  ;;  %v316_v7 = vld [vmem:[#allocation5 + $0x5c0] sm:$0xff]  ;;  %668 = vmatprep.subr.mxu0 %v189_v4  ;;  %p1986_p7 = scmp.ne.s32.totalorder %s1718_s6, %s1985_s1  ;;  %p1991_p9 = scmp.lt.s32.totalorder %s1985_s1, %s1985_s1 }
  0x5f   :  { %v185_v8 = vld [vmem:[#allocation5 + $0x1a8] sm:$0xff]  ;;  %745 = vmatprep.subr.mxu1 %v317_v5  ;;  %v184_v10 = vld [vmem:[#allocation5 + $0x1a0] sm:$0xff]  ;;  %669 = vmatpush1.msra.mxu0 %v188_v6 }
  0x60   :  { %v313_v9 = vld [vmem:[#allocation5 + $0x5a8] sm:$0xff]  ;;  %v312_v11 = vld [vmem:[#allocation5 + $0x5a0] sm:$0xff]  ;;  %746 = vmatpush1.msra.mxu1 %v316_v7  ;;  %670 = vmatprep.subr.mxu0 %v185_v8  ;;  %p1992_p10 = por %p1991_p9, %p1990_p8 }
  0x61   :  { %v181_v12 = vld [vmem:[#allocation5 + $0x188] sm:$0xff]  ;;  %747 = vmatprep.subr.mxu1 %v313_v9  ;;  %v180_v14 = vld [vmem:[#allocation5 + $0x180] sm:$0xff]  ;;  %671 = vmatpush1.msra.mxu0 %v184_v10 }
  0x62   :  { %v309_v13 = vld [vmem:[#allocation5 + $0x588] sm:$0xff]  ;;  %v308_v15 = vld [vmem:[#allocation5 + $0x580] sm:$0xff]  ;;  %748 = vmatpush1.msra.mxu1 %v312_v11  ;;  %672 = vmatprep.subr.mxu0 %v181_v12  ;;  %p1993_p11 = pnand %p1992_p10, %p1986_p7 }
  0x63   :  { %v177_v16 = vld [vmem:[#allocation5 + $0x168] sm:$0xff]  ;;  %749 = vmatprep.subr.mxu1 %v309_v13  ;;  %v176_v18 = vld [vmem:[#allocation5 + $0x160] sm:$0xff]  ;;  %673 = vmatpush1.msra.mxu0 %v180_v14 }
  0x64   :  { %v305_v17 = vld [vmem:[#allocation5 + $0x568] sm:$0xff]  ;;  %v304_v19 = vld [vmem:[#allocation5 + $0x560] sm:$0xff]  ;;  %750 = vmatpush1.msra.mxu1 %v308_v15  ;;  %674 = vmatprep.subr.mxu0 %v177_v16 }
  0x65   :  { %v173_v20 = vld [vmem:[#allocation5 + $0x148] sm:$0xff]  ;;  %751 = vmatprep.subr.mxu1 %v305_v17  ;;  %v172_v22 = vld [vmem:[#allocation5 + $0x140] sm:$0xff]  ;;  %675 = vmatpush1.msra.mxu0 %v176_v18 }
  0x66   :  { %v301_v21 = vld [vmem:[#allocation5 + $0x548] sm:$0xff]  ;;  %v300_v23 = vld [vmem:[#allocation5 + $0x540] sm:$0xff]  ;;  %752 = vmatpush1.msra.mxu1 %v304_v19  ;;  %676 = vmatprep.subr.mxu0 %v173_v20 }
  0x67   :  { %v169_v24 = vld [vmem:[#allocation5 + $0x128] sm:$0xff]  ;;  %753 = vmatprep.subr.mxu1 %v301_v21  ;;  %v168_v26 = vld [vmem:[#allocation5 + $0x120] sm:$0xff]  ;;  %677 = vmatpush1.msra.mxu0 %v172_v22 }
  0x68   :  { %v297_v25 = vld [vmem:[#allocation5 + $0x528] sm:$0xff]  ;;  %v296_v27 = vld [vmem:[#allocation5 + $0x520] sm:$0xff]  ;;  %754 = vmatpush1.msra.mxu1 %v300_v23  ;;  %678 = vmatprep.subr.mxu0 %v169_v24 }
  0x69   :  { %v165_v28 = vld [vmem:[#allocation5 + $0x108] sm:$0xff]  ;;  %755 = vmatprep.subr.mxu1 %v297_v25  ;;  %v164_v30 = vld [vmem:[#allocation5 + $0x100] sm:$0xff]  ;;  %679 = vmatpush1.msra.mxu0 %v168_v26 }
  0x6a   :  { %v293_v29 = vld [vmem:[#allocation5 + $0x508] sm:$0xff]  ;;  %v292_v31 = vld [vmem:[#allocation5 + $0x500] sm:$0xff]  ;;  %756 = vmatpush1.msra.mxu1 %v296_v27  ;;  %680 = vmatprep.subr.mxu0 %v165_v28 }
  0x6b   :  { %v161_v32 = vld [vmem:[#allocation5 + $0xe8] sm:$0xff]  ;;  %757 = vmatprep.subr.mxu1 %v293_v29  ;;  %v160_v34 = vld [vmem:[#allocation5 + $0xe0] sm:$0xff]  ;;  %681 = vmatpush1.msra.mxu0 %v164_v30 }
  0x6c   :  { %v289_v33 = vld [vmem:[#allocation5 + $0x4e8] sm:$0xff]  ;;  %v288_v35 = vld [vmem:[#allocation5 + $0x4e0] sm:$0xff]  ;;  %758 = vmatpush1.msra.mxu1 %v292_v31  ;;  %682 = vmatprep.subr.mxu0 %v161_v32 }
  0x6d   :  { %v157_v36 = vld [vmem:[#allocation5 + $0xc8] sm:$0xff]  ;;  %759 = vmatprep.subr.mxu1 %v289_v33  ;;  %v156_v38 = vld [vmem:[#allocation5 + $0xc0] sm:$0xff]  ;;  %683 = vmatpush1.msra.mxu0 %v160_v34 }
  0x6e   :  { %v285_v37 = vld [vmem:[#allocation5 + $0x4c8] sm:$0xff]  ;;  %v284_v39 = vld [vmem:[#allocation5 + $0x4c0] sm:$0xff]  ;;  %760 = vmatpush1.msra.mxu1 %v288_v35  ;;  %684 = vmatprep.subr.mxu0 %v157_v36 }
  0x6f   :  { %v153_v40 = vld [vmem:[#allocation5 + $0xa8] sm:$0xff]  ;;  %761 = vmatprep.subr.mxu1 %v285_v37  ;;  %v152_v42 = vld [vmem:[#allocation5 + $0xa0] sm:$0xff]  ;;  %685 = vmatpush1.msra.mxu0 %v156_v38 }
  0x70   :  { %v281_v41 = vld [vmem:[#allocation5 + $0x4a8] sm:$0xff]  ;;  %v280_v43 = vld [vmem:[#allocation5 + $0x4a0] sm:$0xff]  ;;  %762 = vmatpush1.msra.mxu1 %v284_v39  ;;  %686 = vmatprep.subr.mxu0 %v153_v40 }
  0x71   :  { %v149_v44 = vld [vmem:[#allocation5 + $0x88] sm:$0xff]  ;;  %763 = vmatprep.subr.mxu1 %v281_v41  ;;  %v148_v46 = vld [vmem:[#allocation5 + $0x80] sm:$0xff]  ;;  %687 = vmatpush1.msra.mxu0 %v152_v42 }
  0x72   :  { %v277_v45 = vld [vmem:[#allocation5 + $0x488] sm:$0xff]  ;;  %v276_v47 = vld [vmem:[#allocation5 + $0x480] sm:$0xff]  ;;  %764 = vmatpush1.msra.mxu1 %v280_v43  ;;  %688 = vmatprep.subr.mxu0 %v149_v44 }
  0x73   :  { %v145_v48 = vld [vmem:[#allocation5 + $0x68] sm:$0xff]  ;;  %765 = vmatprep.subr.mxu1 %v277_v45  ;;  %v144_v50 = vld [vmem:[#allocation5 + $0x60] sm:$0xff]  ;;  %689 = vmatpush1.msra.mxu0 %v148_v46 }
  0x74   :  { %v273_v49 = vld [vmem:[#allocation5 + $0x468] sm:$0xff]  ;;  %v272_v51 = vld [vmem:[#allocation5 + $0x460] sm:$0xff]  ;;  %766 = vmatpush1.msra.mxu1 %v276_v47  ;;  %690 = vmatprep.subr.mxu0 %v145_v48 }
  0x75   :  { %v141_v52 = vld [vmem:[#allocation5 + $0x48] sm:$0xff]  ;;  %767 = vmatprep.subr.mxu1 %v273_v49  ;;  %v140_v54 = vld [vmem:[#allocation5 + $0x40] sm:$0xff]  ;;  %691 = vmatpush1.msra.mxu0 %v144_v50 }
  0x76   :  { %v269_v53 = vld [vmem:[#allocation5 + $0x448] sm:$0xff]  ;;  %v268_v55 = vld [vmem:[#allocation5 + $0x440] sm:$0xff]  ;;  %768 = vmatpush1.msra.mxu1 %v272_v51  ;;  %692 = vmatprep.subr.mxu0 %v141_v52 }
  0x77   :  { %v137_v56 = vld [vmem:[#allocation5 + $0x28] sm:$0xff]  ;;  %769 = vmatprep.subr.mxu1 %v269_v53  ;;  %v136_v58 = vld [vmem:[#allocation5 + $0x20] sm:$0xff]  ;;  %693 = vmatpush1.msra.mxu0 %v140_v54 }
  0x78   :  { %v265_v57 = vld [vmem:[#allocation5 + $0x428] sm:$0xff]  ;;  %v264_v59 = vld [vmem:[#allocation5 + $0x420] sm:$0xff]  ;;  %770 = vmatpush1.msra.mxu1 %v268_v55  ;;  %694 = vmatprep.subr.mxu0 %v137_v56 }
  0x79   :  { %v133_v60 = vld [vmem:[#allocation5 + $0x8] sm:$0xff]  ;;  %771 = vmatprep.subr.mxu1 %v265_v57  ;;  %v132_v62 = vld [vmem:[#allocation5] sm:$0xff]  ;;  %695 = vmatpush1.msra.mxu0 %v136_v58 }
  0x7a   :  { %v261_v61 = vld [vmem:[#allocation5 + $0x408] sm:$0xff]  ;;  %v260_v63 = vld [vmem:[#allocation5 + $0x400] sm:$0xff]  ;;  %772 = vmatpush1.msra.mxu1 %v264_v59  ;;  %696 = vmatprep.subr.mxu0 %v133_v60 }
  0x7b   :  { %v257_v0 = vld [vmem:[#allocation5 + $0x3e8] sm:$0xff]  ;;  %773 = vmatprep.subr.mxu1 %v261_v61  ;;  %v256_v2 = vld [vmem:[#allocation5 + $0x3e0] sm:$0xff]  ;;  %697 = vmatpush1.msra.mxu0 %v132_v62 }
  0x7c   :  { %v385_v1 = vld [vmem:[#allocation5 + $0x7e8] sm:$0xff]  ;;  %v384_v3 = vld [vmem:[#allocation5 + $0x7e0] sm:$0xff]  ;;  %774 = vmatpush1.msra.mxu1 %v260_v63  ;;  %698 = vmatprep.subr.mxu0 %v257_v0 }
  0x7d   :  { %v253_v4 = vld [vmem:[#allocation5 + $0x3c8] sm:$0xff]  ;;  %775 = vmatprep.subr.mxu1 %v385_v1  ;;  %v252_v6 = vld [vmem:[#allocation5 + $0x3c0] sm:$0xff]  ;;  %699 = vmatpush2.msra.mxu0 %v256_v2  ;;  %v119_v2 = vld [vmem:[#allocation2 + $0x18] sm:$0xff] }
  0x7e   :  { %v381_v5 = vld [vmem:[#allocation5 + $0x7c8] sm:$0xff]  ;;  %v380_v7 = vld [vmem:[#allocation5 + $0x7c0] sm:$0xff]  ;;  %776 = vmatpush2.msra.mxu1 %v384_v3  ;;  %700 = vmatprep.subr.mxu0 %v253_v4 }
  0x7f   :  { %v249_v8 = vld [vmem:[#allocation5 + $0x3a8] sm:$0xff]  ;;  %777 = vmatprep.subr.mxu1 %v381_v5  ;;  %v248_v10 = vld [vmem:[#allocation5 + $0x3a0] sm:$0xff]  ;;  %701 = vmatpush2.msra.mxu0 %v252_v6  ;;  %v118_v5 = vld [vmem:[#allocation2 + $0x10] sm:$0xff] }
  0x80   :  { %v377_v9 = vld [vmem:[#allocation5 + $0x7a8] sm:$0xff]  ;;  %v376_v11 = vld [vmem:[#allocation5 + $0x7a0] sm:$0xff]  ;;  %778 = vmatpush2.msra.mxu1 %v380_v7  ;;  %702 = vmatprep.subr.mxu0 %v249_v8 }
  0x81   :  { %v245_v12 = vld [vmem:[#allocation5 + $0x388] sm:$0xff]  ;;  %779 = vmatprep.subr.mxu1 %v377_v9  ;;  %v244_v14 = vld [vmem:[#allocation5 + $0x380] sm:$0xff]  ;;  %703 = vmatpush2.msra.mxu0 %v248_v10 }
  0x82   :  { %v373_v13 = vld [vmem:[#allocation5 + $0x788] sm:$0xff]  ;;  %v372_v15 = vld [vmem:[#allocation5 + $0x780] sm:$0xff]  ;;  %780 = vmatpush2.msra.mxu1 %v376_v11  ;;  %704 = vmatprep.subr.mxu0 %v245_v12 }
  0x83   :  { %v241_v16 = vld [vmem:[#allocation5 + $0x368] sm:$0xff]  ;;  %781 = vmatprep.subr.mxu1 %v373_v13  ;;  %v240_v18 = vld [vmem:[#allocation5 + $0x360] sm:$0xff]  ;;  %705 = vmatpush2.msra.mxu0 %v244_v14 }
  0x84   :  { %v369_v17 = vld [vmem:[#allocation5 + $0x768] sm:$0xff]  ;;  %v368_v19 = vld [vmem:[#allocation5 + $0x760] sm:$0xff]  ;;  %782 = vmatpush2.msra.mxu1 %v372_v15  ;;  %706 = vmatprep.subr.mxu0 %v241_v16 }
  0x85   :  { %v237_v20 = vld [vmem:[#allocation5 + $0x348] sm:$0xff]  ;;  %783 = vmatprep.subr.mxu1 %v369_v17  ;;  %v236_v22 = vld [vmem:[#allocation5 + $0x340] sm:$0xff]  ;;  %707 = vmatpush2.msra.mxu0 %v240_v18 }
  0x86   :  { %v365_v21 = vld [vmem:[#allocation5 + $0x748] sm:$0xff]  ;;  %v364_v23 = vld [vmem:[#allocation5 + $0x740] sm:$0xff]  ;;  %784 = vmatpush2.msra.mxu1 %v368_v19  ;;  %708 = vmatprep.subr.mxu0 %v237_v20 }
  0x87   :  { %v233_v24 = vld [vmem:[#allocation5 + $0x328] sm:$0xff]  ;;  %785 = vmatprep.subr.mxu1 %v365_v21  ;;  %v232_v26 = vld [vmem:[#allocation5 + $0x320] sm:$0xff]  ;;  %709 = vmatpush2.msra.mxu0 %v236_v22 }
  0x88   :  { %v361_v25 = vld [vmem:[#allocation5 + $0x728] sm:$0xff]  ;;  %v360_v27 = vld [vmem:[#allocation5 + $0x720] sm:$0xff]  ;;  %786 = vmatpush2.msra.mxu1 %v364_v23  ;;  %710 = vmatprep.subr.mxu0 %v233_v24 }
  0x89   :  { %v229_v28 = vld [vmem:[#allocation5 + $0x308] sm:$0xff]  ;;  %787 = vmatprep.subr.mxu1 %v361_v25  ;;  %v228_v30 = vld [vmem:[#allocation5 + $0x300] sm:$0xff]  ;;  %711 = vmatpush2.msra.mxu0 %v232_v26 }
  0x8a   :  { %v357_v29 = vld [vmem:[#allocation5 + $0x708] sm:$0xff]  ;;  %v356_v31 = vld [vmem:[#allocation5 + $0x700] sm:$0xff]  ;;  %788 = vmatpush2.msra.mxu1 %v360_v27  ;;  %712 = vmatprep.subr.mxu0 %v229_v28 }
  0x8b   :  { %v225_v32 = vld [vmem:[#allocation5 + $0x2e8] sm:$0xff]  ;;  %789 = vmatprep.subr.mxu1 %v357_v29  ;;  %v224_v34 = vld [vmem:[#allocation5 + $0x2e0] sm:$0xff]  ;;  %713 = vmatpush2.msra.mxu0 %v228_v30 }
  0x8c   :  { %v353_v33 = vld [vmem:[#allocation5 + $0x6e8] sm:$0xff]  ;;  %v352_v35 = vld [vmem:[#allocation5 + $0x6e0] sm:$0xff]  ;;  %790 = vmatpush2.msra.mxu1 %v356_v31  ;;  %714 = vmatprep.subr.mxu0 %v225_v32 }
  0x8d   :  { %v221_v36 = vld [vmem:[#allocation5 + $0x2c8] sm:$0xff]  ;;  %791 = vmatprep.subr.mxu1 %v353_v33  ;;  %v220_v38 = vld [vmem:[#allocation5 + $0x2c0] sm:$0xff]  ;;  %715 = vmatpush2.msra.mxu0 %v224_v34 }
  0x8e   :  { %v349_v37 = vld [vmem:[#allocation5 + $0x6c8] sm:$0xff]  ;;  %v348_v39 = vld [vmem:[#allocation5 + $0x6c0] sm:$0xff]  ;;  %792 = vmatpush2.msra.mxu1 %v352_v35  ;;  %716 = vmatprep.subr.mxu0 %v221_v36 }
  0x8f   :  { %v217_v40 = vld [vmem:[#allocation5 + $0x2a8] sm:$0xff]  ;;  %793 = vmatprep.subr.mxu1 %v349_v37  ;;  %v216_v42 = vld [vmem:[#allocation5 + $0x2a0] sm:$0xff]  ;;  %717 = vmatpush2.msra.mxu0 %v220_v38 }
  0x90   :  { %v345_v41 = vld [vmem:[#allocation5 + $0x6a8] sm:$0xff]  ;;  %v344_v43 = vld [vmem:[#allocation5 + $0x6a0] sm:$0xff]  ;;  %794 = vmatpush2.msra.mxu1 %v348_v39  ;;  %718 = vmatprep.subr.mxu0 %v217_v40 }
  0x91   :  { %v213_v44 = vld [vmem:[#allocation5 + $0x288] sm:$0xff]  ;;  %795 = vmatprep.subr.mxu1 %v345_v41  ;;  %v212_v46 = vld [vmem:[#allocation5 + $0x280] sm:$0xff]  ;;  %719 = vmatpush2.msra.mxu0 %v216_v42 }
  0x92   :  { %v341_v45 = vld [vmem:[#allocation5 + $0x688] sm:$0xff]  ;;  %v340_v47 = vld [vmem:[#allocation5 + $0x680] sm:$0xff]  ;;  %796 = vmatpush2.msra.mxu1 %v344_v43  ;;  %720 = vmatprep.subr.mxu0 %v213_v44 }
  0x93   :  { %v209_v48 = vld [vmem:[#allocation5 + $0x268] sm:$0xff]  ;;  %797 = vmatprep.subr.mxu1 %v341_v45  ;;  %v208_v50 = vld [vmem:[#allocation5 + $0x260] sm:$0xff]  ;;  %721 = vmatpush2.msra.mxu0 %v212_v46 }
  0x94   :  { %v337_v49 = vld [vmem:[#allocation5 + $0x668] sm:$0xff]  ;;  %v336_v51 = vld [vmem:[#allocation5 + $0x660] sm:$0xff]  ;;  %798 = vmatpush2.msra.mxu1 %v340_v47  ;;  %722 = vmatprep.subr.mxu0 %v209_v48 }
  0x95   :  { %v205_v52 = vld [vmem:[#allocation5 + $0x248] sm:$0xff]  ;;  %799 = vmatprep.subr.mxu1 %v337_v49  ;;  %v204_v54 = vld [vmem:[#allocation5 + $0x240] sm:$0xff]  ;;  %723 = vmatpush2.msra.mxu0 %v208_v50 }
  0x96   :  { %v333_v53 = vld [vmem:[#allocation5 + $0x648] sm:$0xff]  ;;  %v332_v55 = vld [vmem:[#allocation5 + $0x640] sm:$0xff]  ;;  %800 = vmatpush2.msra.mxu1 %v336_v51  ;;  %724 = vmatprep.subr.mxu0 %v205_v52 }
  0x97   :  { %v201_v56 = vld [vmem:[#allocation5 + $0x228] sm:$0xff]  ;;  %801 = vmatprep.subr.mxu1 %v333_v53  ;;  %v200_v58 = vld [vmem:[#allocation5 + $0x220] sm:$0xff]  ;;  %725 = vmatpush2.msra.mxu0 %v204_v54 }
  0x98   :  { %v329_v57 = vld [vmem:[#allocation5 + $0x628] sm:$0xff]  ;;  %v328_v59 = vld [vmem:[#allocation5 + $0x620] sm:$0xff]  ;;  %802 = vmatpush2.msra.mxu1 %v332_v55  ;;  %726 = vmatprep.subr.mxu0 %v201_v56 }
  0x99   :  { %v197_v60 = vld [vmem:[#allocation5 + $0x208] sm:$0xff]  ;;  %803 = vmatprep.subr.mxu1 %v329_v57  ;;  %v196_v62 = vld [vmem:[#allocation5 + $0x200] sm:$0xff]  ;;  %727 = vmatpush2.msra.mxu0 %v200_v58 }
  0x9a   :  { %v325_v61 = vld [vmem:[#allocation5 + $0x608] sm:$0xff]  ;;  %804 = vmatpush2.msra.mxu1 %v328_v59  ;;  %v324_v0 = vld [vmem:[#allocation5 + $0x600] sm:$0xff]  ;;  %728 = vmatprep.subr.mxu0 %v197_v60 }
  0x9b   :  { %v117_v63 = vld [vmem:[#allocation2 + $0x8] sm:$0xff]  ;;  %v116_v1 = vld [vmem:[#allocation2] sm:$0xff]  ;;  %805 = vmatprep.subr.mxu1 %v325_v61  ;;  %729 = vmatpush2.msra.mxu0 %v196_v62 }
  0x9c   :  { %v449_v3 = vld [vmem:[#allocation5 + $0x9e8] sm:$0xff]  ;;  %730 = vmatprep.mubr.f32.mxu0 %v117_v63  ;;  %806 = vmatpush2.msra.mxu1 %v324_v0  ;;  %v448_v6 = vld [vmem:[#allocation5 + $0x9e0] sm:$0xff] }
  0x9d   :  { %v577_v4 = vld [vmem:[#allocation5 + $0xde8] sm:$0xff]  ;;  %731 = vmatmul.mubr.f32.vlgmr.msra.gmra.mxu0 %v116_v1  ;;  %v576_v7 = vld [vmem:[#allocation5 + $0xde0] sm:$0xff]  ;;  %807 = vmatprep.mubr.f32.mxu1 %v119_v2 }
  0x9e   :  { %820 = vmatprep.subr.mxu0 %v449_v3  ;;  %v445_v8 = vld [vmem:[#allocation5 + $0x9c8] sm:$0xff]  ;;  %897 = vmatprep.subr.mxu1 %v577_v4  ;;  %v444_v10 = vld [vmem:[#allocation5 + $0x9c0] sm:$0xff] }
  0x9f   :  { %v573_v9 = vld [vmem:[#allocation5 + $0xdc8] sm:$0xff]  ;;  %808 = vmatmul.mubr.f32.vlgmr.msra.gmra.mxu1 %v118_v5  ;;  %v572_v11 = vld [vmem:[#allocation5 + $0xdc0] sm:$0xff]  ;;  %821 = vmatpush1.msra.mxu0 %v448_v6 }
  0xa0   :  { %898 = vmatpush1.msra.mxu1 %v576_v7  ;;  %v441_v12 = vld [vmem:[#allocation5 + $0x9a8] sm:$0xff]  ;;  %822 = vmatprep.subr.mxu0 %v445_v8  ;;  %v440_v14 = vld [vmem:[#allocation5 + $0x9a0] sm:$0xff] }
  0xa1   :  { %v569_v13 = vld [vmem:[#allocation5 + $0xda8] sm:$0xff]  ;;  %899 = vmatprep.subr.mxu1 %v573_v9  ;;  %v568_v15 = vld [vmem:[#allocation5 + $0xda0] sm:$0xff]  ;;  %823 = vmatpush1.msra.mxu0 %v444_v10 }
  0xa2   :  { %900 = vmatpush1.msra.mxu1 %v572_v11  ;;  %v437_v16 = vld [vmem:[#allocation5 + $0x988] sm:$0xff]  ;;  %824 = vmatprep.subr.mxu0 %v441_v12  ;;  %v436_v18 = vld [vmem:[#allocation5 + $0x980] sm:$0xff] }
  0xa3   :  { %v565_v17 = vld [vmem:[#allocation5 + $0xd88] sm:$0xff]  ;;  %901 = vmatprep.subr.mxu1 %v569_v13  ;;  %v564_v19 = vld [vmem:[#allocation5 + $0xd80] sm:$0xff]  ;;  %825 = vmatpush1.msra.mxu0 %v440_v14 }
  0xa4   :  { %902 = vmatpush1.msra.mxu1 %v568_v15  ;;  %v433_v20 = vld [vmem:[#allocation5 + $0x968] sm:$0xff]  ;;  %826 = vmatprep.subr.mxu0 %v437_v16  ;;  %v432_v22 = vld [vmem:[#allocation5 + $0x960] sm:$0xff] }
  0xa5   :  { %v561_v21 = vld [vmem:[#allocation5 + $0xd68] sm:$0xff]  ;;  %903 = vmatprep.subr.mxu1 %v565_v17  ;;  %v560_v23 = vld [vmem:[#allocation5 + $0xd60] sm:$0xff]  ;;  %827 = vmatpush1.msra.mxu0 %v436_v18 }
  0xa6   :  { %904 = vmatpush1.msra.mxu1 %v564_v19  ;;  %v429_v24 = vld [vmem:[#allocation5 + $0x948] sm:$0xff]  ;;  %828 = vmatprep.subr.mxu0 %v433_v20  ;;  %v428_v26 = vld [vmem:[#allocation5 + $0x940] sm:$0xff] }
  0xa7   :  { %v557_v25 = vld [vmem:[#allocation5 + $0xd48] sm:$0xff]  ;;  %905 = vmatprep.subr.mxu1 %v561_v21  ;;  %v556_v27 = vld [vmem:[#allocation5 + $0xd40] sm:$0xff]  ;;  %829 = vmatpush1.msra.mxu0 %v432_v22 }
  0xa8   :  { %906 = vmatpush1.msra.mxu1 %v560_v23  ;;  %v425_v28 = vld [vmem:[#allocation5 + $0x928] sm:$0xff]  ;;  %830 = vmatprep.subr.mxu0 %v429_v24  ;;  %v424_v30 = vld [vmem:[#allocation5 + $0x920] sm:$0xff] }
  0xa9   :  { %v553_v29 = vld [vmem:[#allocation5 + $0xd28] sm:$0xff]  ;;  %907 = vmatprep.subr.mxu1 %v557_v25  ;;  %v552_v31 = vld [vmem:[#allocation5 + $0xd20] sm:$0xff]  ;;  %831 = vmatpush1.msra.mxu0 %v428_v26 }
  0xaa   :  { %908 = vmatpush1.msra.mxu1 %v556_v27  ;;  %v421_v32 = vld [vmem:[#allocation5 + $0x908] sm:$0xff]  ;;  %832 = vmatprep.subr.mxu0 %v425_v28  ;;  %v420_v34 = vld [vmem:[#allocation5 + $0x900] sm:$0xff] }
  0xab   :  { %v549_v33 = vld [vmem:[#allocation5 + $0xd08] sm:$0xff]  ;;  %909 = vmatprep.subr.mxu1 %v553_v29  ;;  %v548_v35 = vld [vmem:[#allocation5 + $0xd00] sm:$0xff]  ;;  %833 = vmatpush1.msra.mxu0 %v424_v30 }
  0xac   :  { %910 = vmatpush1.msra.mxu1 %v552_v31  ;;  %v417_v36 = vld [vmem:[#allocation5 + $0x8e8] sm:$0xff]  ;;  %834 = vmatprep.subr.mxu0 %v421_v32  ;;  %v416_v38 = vld [vmem:[#allocation5 + $0x8e0] sm:$0xff] }
  0xad   :  { %v545_v37 = vld [vmem:[#allocation5 + $0xce8] sm:$0xff]  ;;  %911 = vmatprep.subr.mxu1 %v549_v33  ;;  %v544_v39 = vld [vmem:[#allocation5 + $0xce0] sm:$0xff]  ;;  %835 = vmatpush1.msra.mxu0 %v420_v34 }
  0xae   :  { %912 = vmatpush1.msra.mxu1 %v548_v35  ;;  %v413_v40 = vld [vmem:[#allocation5 + $0x8c8] sm:$0xff]  ;;  %836 = vmatprep.subr.mxu0 %v417_v36  ;;  %v412_v42 = vld [vmem:[#allocation5 + $0x8c0] sm:$0xff] }
  0xaf   :  { %v541_v41 = vld [vmem:[#allocation5 + $0xcc8] sm:$0xff]  ;;  %913 = vmatprep.subr.mxu1 %v545_v37  ;;  %v540_v43 = vld [vmem:[#allocation5 + $0xcc0] sm:$0xff]  ;;  %837 = vmatpush1.msra.mxu0 %v416_v38 }
  0xb0   :  { %914 = vmatpush1.msra.mxu1 %v544_v39  ;;  %v409_v44 = vld [vmem:[#allocation5 + $0x8a8] sm:$0xff]  ;;  %838 = vmatprep.subr.mxu0 %v413_v40  ;;  %v408_v46 = vld [vmem:[#allocation5 + $0x8a0] sm:$0xff] }
  0xb1   :  { %v537_v45 = vld [vmem:[#allocation5 + $0xca8] sm:$0xff]  ;;  %915 = vmatprep.subr.mxu1 %v541_v41  ;;  %v536_v47 = vld [vmem:[#allocation5 + $0xca0] sm:$0xff]  ;;  %839 = vmatpush1.msra.mxu0 %v412_v42 }
  0xb2   :  { %916 = vmatpush1.msra.mxu1 %v540_v43  ;;  %v405_v48 = vld [vmem:[#allocation5 + $0x888] sm:$0xff]  ;;  %840 = vmatprep.subr.mxu0 %v409_v44  ;;  %v404_v50 = vld [vmem:[#allocation5 + $0x880] sm:$0xff] }
  0xb3   :  { %v533_v49 = vld [vmem:[#allocation5 + $0xc88] sm:$0xff]  ;;  %917 = vmatprep.subr.mxu1 %v537_v45  ;;  %v532_v51 = vld [vmem:[#allocation5 + $0xc80] sm:$0xff]  ;;  %841 = vmatpush1.msra.mxu0 %v408_v46 }
  0xb4   :  { %918 = vmatpush1.msra.mxu1 %v536_v47  ;;  %v401_v52 = vld [vmem:[#allocation5 + $0x868] sm:$0xff]  ;;  %842 = vmatprep.subr.mxu0 %v405_v48  ;;  %v400_v54 = vld [vmem:[#allocation5 + $0x860] sm:$0xff] }
  0xb5   :  { %v529_v53 = vld [vmem:[#allocation5 + $0xc68] sm:$0xff]  ;;  %919 = vmatprep.subr.mxu1 %v533_v49  ;;  %v528_v55 = vld [vmem:[#allocation5 + $0xc60] sm:$0xff]  ;;  %843 = vmatpush1.msra.mxu0 %v404_v50 }
  0xb6   :  { %920 = vmatpush1.msra.mxu1 %v532_v51  ;;  %v397_v56 = vld [vmem:[#allocation5 + $0x848] sm:$0xff]  ;;  %844 = vmatprep.subr.mxu0 %v401_v52  ;;  %v396_v58 = vld [vmem:[#allocation5 + $0x840] sm:$0xff] }
  0xb7   :  { %v525_v57 = vld [vmem:[#allocation5 + $0xc48] sm:$0xff]  ;;  %921 = vmatprep.subr.mxu1 %v529_v53  ;;  %v524_v59 = vld [vmem:[#allocation5 + $0xc40] sm:$0xff]  ;;  %845 = vmatpush1.msra.mxu0 %v400_v54 }
  0xb8   :  { %922 = vmatpush1.msra.mxu1 %v528_v55  ;;  %v393_v60 = vld [vmem:[#allocation5 + $0x828] sm:$0xff]  ;;  %846 = vmatprep.subr.mxu0 %v397_v56  ;;  %v392_v62 = vld [vmem:[#allocation5 + $0x820] sm:$0xff] }
  0xb9   :  { %v521_v61 = vld [vmem:[#allocation5 + $0xc28] sm:$0xff]  ;;  %923 = vmatprep.subr.mxu1 %v525_v57  ;;  %v520_v63 = vld [vmem:[#allocation5 + $0xc20] sm:$0xff]  ;;  %847 = vmatpush1.msra.mxu0 %v396_v58 }
  0xba   :  { %924 = vmatpush1.msra.mxu1 %v524_v59  ;;  %v389_v0 = vld [vmem:[#allocation5 + $0x808] sm:$0xff]  ;;  %848 = vmatprep.subr.mxu0 %v393_v60  ;;  %v388_v2 = vld [vmem:[#allocation5 + $0x800] sm:$0xff] }
  0xbb   :  { %v517_v1 = vld [vmem:[#allocation5 + $0xc08] sm:$0xff]  ;;  %925 = vmatprep.subr.mxu1 %v521_v61  ;;  %v516_v3 = vld [vmem:[#allocation5 + $0xc00] sm:$0xff]  ;;  %849 = vmatpush1.msra.mxu0 %v392_v62  ;;  %v127_v62 = vld [vmem:[#allocation2 + $0x58] sm:$0xff] }
  0xbc   :  { %926 = vmatpush1.msra.mxu1 %v520_v63  ;;  %v513_v4 = vld [vmem:[#allocation5 + $0xbe8] sm:$0xff]  ;;  %850 = vmatprep.subr.mxu0 %v389_v0  ;;  %v512_v6 = vld [vmem:[#allocation5 + $0xbe0] sm:$0xff] }
  0xbd   :  { %v641_v5 = vld [vmem:[#allocation5 + $0xfe8] sm:$0xff]  ;;  %927 = vmatprep.subr.mxu1 %v517_v1  ;;  %v640_v7 = vld [vmem:[#allocation5 + $0xfe0] sm:$0xff]  ;;  %851 = vmatpush1.msra.mxu0 %v388_v2  ;;  %v126_v1 = vld [vmem:[#allocation2 + $0x50] sm:$0xff] }
  0xbe   :  { %928 = vmatpush1.msra.mxu1 %v516_v3  ;;  %v509_v8 = vld [vmem:[#allocation5 + $0xbc8] sm:$0xff]  ;;  %852 = vmatprep.subr.mxu0 %v513_v4  ;;  %v508_v10 = vld [vmem:[#allocation5 + $0xbc0] sm:$0xff] }
  0xbf   :  { %v637_v9 = vld [vmem:[#allocation5 + $0xfc8] sm:$0xff]  ;;  %929 = vmatprep.subr.mxu1 %v641_v5  ;;  %v636_v11 = vld [vmem:[#allocation5 + $0xfc0] sm:$0xff]  ;;  %853 = vmatpush2.msra.mxu0 %v512_v6 }
  0xc0   :  { %930 = vmatpush2.msra.mxu1 %v640_v7  ;;  %v505_v12 = vld [vmem:[#allocation5 + $0xba8] sm:$0xff]  ;;  %854 = vmatprep.subr.mxu0 %v509_v8  ;;  %v504_v14 = vld [vmem:[#allocation5 + $0xba0] sm:$0xff] }
  0xc1   :  { %v633_v13 = vld [vmem:[#allocation5 + $0xfa8] sm:$0xff]  ;;  %931 = vmatprep.subr.mxu1 %v637_v9  ;;  %v632_v15 = vld [vmem:[#allocation5 + $0xfa0] sm:$0xff]  ;;  %855 = vmatpush2.msra.mxu0 %v508_v10  ;;  %v123_v10 = vld [vmem:[#allocation2 + $0x38] sm:$0xff] }
  0xc2   :  { %932 = vmatpush2.msra.mxu1 %v636_v11  ;;  %v501_v16 = vld [vmem:[#allocation5 + $0xb88] sm:$0xff]  ;;  %856 = vmatprep.subr.mxu0 %v505_v12  ;;  %v500_v18 = vld [vmem:[#allocation5 + $0xb80] sm:$0xff]  ;;  %v195_v11 = vld [vmem:[#allocation5 + $0x1f8] sm:$0xff] }
  0xc3   :  { %v629_v17 = vld [vmem:[#allocation5 + $0xf88] sm:$0xff]  ;;  %933 = vmatprep.subr.mxu1 %v633_v13  ;;  %v628_v19 = vld [vmem:[#allocation5 + $0xf80] sm:$0xff]  ;;  %857 = vmatpush2.msra.mxu0 %v504_v14  ;;  %v323_v12 = vld [vmem:[#allocation5 + $0x5f8] sm:$0xff] }
  0xc4   :  { %934 = vmatpush2.msra.mxu1 %v632_v15  ;;  %v497_v20 = vld [vmem:[#allocation5 + $0xb68] sm:$0xff]  ;;  %858 = vmatprep.subr.mxu0 %v501_v16  ;;  %v496_v22 = vld [vmem:[#allocation5 + $0xb60] sm:$0xff]  ;;  %v122_v13 = vld [vmem:[#allocation2 + $0x30] sm:$0xff] }
  0xc5   :  { %v625_v21 = vld [vmem:[#allocation5 + $0xf68] sm:$0xff]  ;;  %935 = vmatprep.subr.mxu1 %v629_v17  ;;  %v624_v23 = vld [vmem:[#allocation5 + $0xf60] sm:$0xff]  ;;  %859 = vmatpush2.msra.mxu0 %v500_v18  ;;  %v194_v14 = vld [vmem:[#allocation5 + $0x1f0] sm:$0xff] }
  0xc6   :  { %936 = vmatpush2.msra.mxu1 %v628_v19  ;;  %v493_v24 = vld [vmem:[#allocation5 + $0xb48] sm:$0xff]  ;;  %860 = vmatprep.subr.mxu0 %v497_v20  ;;  %v492_v26 = vld [vmem:[#allocation5 + $0xb40] sm:$0xff]  ;;  %v322_v15 = vld [vmem:[#allocation5 + $0x5f0] sm:$0xff] }
  0xc7   :  { %v621_v25 = vld [vmem:[#allocation5 + $0xf48] sm:$0xff]  ;;  %937 = vmatprep.subr.mxu1 %v625_v21  ;;  %v620_v27 = vld [vmem:[#allocation5 + $0xf40] sm:$0xff]  ;;  %861 = vmatpush2.msra.mxu0 %v496_v22  ;;  %v191_v16 = vld [vmem:[#allocation5 + $0x1d8] sm:$0xff] }
  0xc8   :  { %938 = vmatpush2.msra.mxu1 %v624_v23  ;;  %v489_v28 = vld [vmem:[#allocation5 + $0xb28] sm:$0xff]  ;;  %862 = vmatprep.subr.mxu0 %v493_v24  ;;  %v488_v30 = vld [vmem:[#allocation5 + $0xb20] sm:$0xff]  ;;  %v319_v17 = vld [vmem:[#allocation5 + $0x5d8] sm:$0xff] }
  0xc9   :  { %v617_v29 = vld [vmem:[#allocation5 + $0xf28] sm:$0xff]  ;;  %939 = vmatprep.subr.mxu1 %v621_v25  ;;  %v616_v31 = vld [vmem:[#allocation5 + $0xf20] sm:$0xff]  ;;  %863 = vmatpush2.msra.mxu0 %v492_v26  ;;  %v190_v19 = vld [vmem:[#allocation5 + $0x1d0] sm:$0xff] }
  0xca   :  { %940 = vmatpush2.msra.mxu1 %v620_v27  ;;  %v485_v32 = vld [vmem:[#allocation5 + $0xb08] sm:$0xff]  ;;  %864 = vmatprep.subr.mxu0 %v489_v28  ;;  %v484_v34 = vld [vmem:[#allocation5 + $0xb00] sm:$0xff]  ;;  %v318_v20 = vld [vmem:[#allocation5 + $0x5d0] sm:$0xff] }
  0xcb   :  { %v613_v33 = vld [vmem:[#allocation5 + $0xf08] sm:$0xff]  ;;  %941 = vmatprep.subr.mxu1 %v617_v29  ;;  %v612_v35 = vld [vmem:[#allocation5 + $0xf00] sm:$0xff]  ;;  %865 = vmatpush2.msra.mxu0 %v488_v30  ;;  %v187_v22 = vld [vmem:[#allocation5 + $0x1b8] sm:$0xff] }
  0xcc   :  { %942 = vmatpush2.msra.mxu1 %v616_v31  ;;  %v481_v36 = vld [vmem:[#allocation5 + $0xae8] sm:$0xff]  ;;  %866 = vmatprep.subr.mxu0 %v485_v32  ;;  %v480_v38 = vld [vmem:[#allocation5 + $0xae0] sm:$0xff]  ;;  %v315_v23 = vld [vmem:[#allocation5 + $0x5b8] sm:$0xff] }
  0xcd   :  { %v609_v37 = vld [vmem:[#allocation5 + $0xee8] sm:$0xff]  ;;  %943 = vmatprep.subr.mxu1 %v613_v33  ;;  %v608_v39 = vld [vmem:[#allocation5 + $0xee0] sm:$0xff]  ;;  %867 = vmatpush2.msra.mxu0 %v484_v34  ;;  %v131_v24 = vld [vmem:[#allocation2 + $0x78] sm:$0xff] }
  0xce   :  { %944 = vmatpush2.msra.mxu1 %v612_v35  ;;  %v477_v40 = vld [vmem:[#allocation5 + $0xac8] sm:$0xff]  ;;  %868 = vmatprep.subr.mxu0 %v481_v36  ;;  %v476_v42 = vld [vmem:[#allocation5 + $0xac0] sm:$0xff]  ;;  %v186_v25 = vld [vmem:[#allocation5 + $0x1b0] sm:$0xff] }
  0xcf   :  { %v605_v41 = vld [vmem:[#allocation5 + $0xec8] sm:$0xff]  ;;  %945 = vmatprep.subr.mxu1 %v609_v37  ;;  %v604_v43 = vld [vmem:[#allocation5 + $0xec0] sm:$0xff]  ;;  %869 = vmatpush2.msra.mxu0 %v480_v38  ;;  %v314_v26 = vld [vmem:[#allocation5 + $0x5b0] sm:$0xff] }
  0xd0   :  { %946 = vmatpush2.msra.mxu1 %v608_v39  ;;  %v473_v44 = vld [vmem:[#allocation5 + $0xaa8] sm:$0xff]  ;;  %870 = vmatprep.subr.mxu0 %v477_v40  ;;  %v472_v46 = vld [vmem:[#allocation5 + $0xaa0] sm:$0xff]  ;;  %v183_v27 = vld [vmem:[#allocation5 + $0x198] sm:$0xff] }
  0xd1   :  { %v601_v45 = vld [vmem:[#allocation5 + $0xea8] sm:$0xff]  ;;  %947 = vmatprep.subr.mxu1 %v605_v41  ;;  %v600_v47 = vld [vmem:[#allocation5 + $0xea0] sm:$0xff]  ;;  %871 = vmatpush2.msra.mxu0 %v476_v42  ;;  %v130_v28 = vld [vmem:[#allocation2 + $0x70] sm:$0xff] }
  0xd2   :  { %948 = vmatpush2.msra.mxu1 %v604_v43  ;;  %v469_v48 = vld [vmem:[#allocation5 + $0xa88] sm:$0xff]  ;;  %872 = vmatprep.subr.mxu0 %v473_v44  ;;  %v468_v50 = vld [vmem:[#allocation5 + $0xa80] sm:$0xff]  ;;  %v311_v29 = vld [vmem:[#allocation5 + $0x598] sm:$0xff] }
  0xd3   :  { %v597_v49 = vld [vmem:[#allocation5 + $0xe88] sm:$0xff]  ;;  %949 = vmatprep.subr.mxu1 %v601_v45  ;;  %v596_v51 = vld [vmem:[#allocation5 + $0xe80] sm:$0xff]  ;;  %873 = vmatpush2.msra.mxu0 %v472_v46  ;;  %v182_v30 = vld [vmem:[#allocation5 + $0x190] sm:$0xff] }
  0xd4   :  { %950 = vmatpush2.msra.mxu1 %v600_v47  ;;  %v465_v52 = vld [vmem:[#allocation5 + $0xa68] sm:$0xff]  ;;  %874 = vmatprep.subr.mxu0 %v469_v48  ;;  %v464_v54 = vld [vmem:[#allocation5 + $0xa60] sm:$0xff]  ;;  %v310_v31 = vld [vmem:[#allocation5 + $0x590] sm:$0xff] }
  0xd5   :  { %v593_v53 = vld [vmem:[#allocation5 + $0xe68] sm:$0xff]  ;;  %951 = vmatprep.subr.mxu1 %v597_v49  ;;  %v592_v55 = vld [vmem:[#allocation5 + $0xe60] sm:$0xff]  ;;  %875 = vmatpush2.msra.mxu0 %v468_v50  ;;  %v179_v32 = vld [vmem:[#allocation5 + $0x178] sm:$0xff] }
  0xd6   :  { %952 = vmatpush2.msra.mxu1 %v596_v51  ;;  %v125_v56 = vld [vmem:[#allocation2 + $0x48] sm:$0xff]  ;;  %876 = vmatprep.subr.mxu0 %v465_v52  ;;  %v124_v59 = vld [vmem:[#allocation2 + $0x40] sm:$0xff]  ;;  %v307_v33 = vld [vmem:[#allocation5 + $0x578] sm:$0xff] }
  0xd7   :  { %v461_v57 = vld [vmem:[#allocation5 + $0xa48] sm:$0xff]  ;;  %953 = vmatprep.subr.mxu1 %v593_v53  ;;  %877 = vmatpush2.msra.mxu0 %v464_v54  ;;  %v460_v60 = vld [vmem:[#allocation5 + $0xa40] sm:$0xff]  ;;  %v178_v34 = vld [vmem:[#allocation5 + $0x170] sm:$0xff] }
  0xd8   :  { %v589_v58 = vld [vmem:[#allocation5 + $0xe48] sm:$0xff]  ;;  %954 = vmatpush2.msra.mxu1 %v592_v55  ;;  %v588_v61 = vld [vmem:[#allocation5 + $0xe40] sm:$0xff]  ;;  %736 = vmatprep.mubr.f32.mxu0 %v125_v56  ;;  %v306_v35 = vld [vmem:[#allocation5 + $0x570] sm:$0xff] }
  0xd9   :  { %878 = vmatprep.subr.mxu0 %v461_v57  ;;  %v457_v63 = vld [vmem:[#allocation5 + $0xa28] sm:$0xff]  ;;  %955 = vmatprep.subr.mxu1 %v589_v58  ;;  %v456_v2 = vld [vmem:[#allocation5 + $0xa20] sm:$0xff]  ;;  %v175_v36 = vld [vmem:[#allocation5 + $0x158] sm:$0xff] }
  0xda   :  { %737 = vmatmul.mubr.f32.gmra.mxu0 %v124_v59  ;;  %v585_v0 = vld [vmem:[#allocation5 + $0xe28] sm:$0xff]  ;;  %956 = vmatpush2.msra.mxu1 %v588_v61  ;;  %v584_v3 = vld [vmem:[#allocation5 + $0xe20] sm:$0xff]  ;;  %v303_v37 = vld [vmem:[#allocation5 + $0x558] sm:$0xff] }
  0xdb   :  { %879 = vmatpush2.msra.mxu0 %v460_v60  ;;  %813 = vmatprep.mubr.f32.mxu1 %v127_v62  ;;  %v453_v4 = vld [vmem:[#allocation5 + $0xa08] sm:$0xff]  ;;  %v452_v6 = vld [vmem:[#allocation5 + $0xa00] sm:$0xff]  ;;  %v174_v38 = vld [vmem:[#allocation5 + $0x150] sm:$0xff] }
  0xdc   :  { %880 = vmatprep.subr.mxu0 %v457_v63  ;;  %v581_v5 = vld [vmem:[#allocation5 + $0xe08] sm:$0xff]  ;;  %957 = vmatprep.subr.mxu1 %v585_v0  ;;  %v580_v8 = vld [vmem:[#allocation5 + $0xe00] sm:$0xff]  ;;  %v302_v39 = vld [vmem:[#allocation5 + $0x550] sm:$0xff] }
  0xdd   :  { %814 = vmatmul.mubr.f32.gmra.mxu1 %v126_v1  ;;  %v121_v7 = vld [vmem:[#allocation2 + $0x28] sm:$0xff]  ;;  %881 = vmatpush2.msra.mxu0 %v456_v2  ;;  %v120_v9 = vld [vmem:[#allocation2 + $0x20] sm:$0xff]  ;;  %v171_v40 = vld [vmem:[#allocation5 + $0x138] sm:$0xff] }
  0xde   :  { %958 = vmatpush2.msra.mxu1 %v584_v3  ;;  %882 = vmatprep.subr.mxu0 %v453_v4  ;;  %v129_v18 = vld [vmem:[#allocation2 + $0x68] sm:$0xff]  ;;  %v128_v21 = vld [vmem:[#allocation2 + $0x60] sm:$0xff]  ;;  %v299_v41 = vld [vmem:[#allocation5 + $0x538] sm:$0xff] }
  0xdf   :  { %959 = vmatprep.subr.mxu1 %v581_v5  ;;  %883 = vmatpush2.msra.mxu0 %v452_v6  ;;  %v170_v42 = vld [vmem:[#allocation5 + $0x130] sm:$0xff]  ;;  %v167_v44 = vld [vmem:[#allocation5 + $0x118] sm:$0xff] }
  0xe0   :  { %884 = vmatprep.mubr.f32.mxu0 %v121_v7  ;;  %960 = vmatpush2.msra.mxu1 %v580_v8  ;;  %v298_v43 = vld [vmem:[#allocation5 + $0x530] sm:$0xff]  ;;  %v295_v45 = vld [vmem:[#allocation5 + $0x518] sm:$0xff] }
  0xe1   :  { %885 = vmatmul.mubr.f32.vlgmr.msra.gmra.mxu0 %v120_v9  ;;  %961 = vmatprep.mubr.f32.mxu1 %v123_v10  ;;  %v166_v46 = vld [vmem:[#allocation5 + $0x110] sm:$0xff]  ;;  %v163_v48 = vld [vmem:[#allocation5 + $0xf8] sm:$0xff] }
  0xe2   :  { %974 = vmatprep.subr.mxu0 %v195_v11  ;;  %1051 = vmatprep.subr.mxu1 %v323_v12  ;;  %v294_v47 = vld [vmem:[#allocation5 + $0x510] sm:$0xff]  ;;  %v291_v49 = vld [vmem:[#allocation5 + $0x4f8] sm:$0xff] }
  0xe3   :  { %962 = vmatmul.mubr.f32.vlgmr.msra.gmra.mxu1 %v122_v13  ;;  %975 = vmatpush1.msra.mxu0 %v194_v14  ;;  %v162_v50 = vld [vmem:[#allocation5 + $0xf0] sm:$0xff]  ;;  %v159_v52 = vld [vmem:[#allocation5 + $0xd8] sm:$0xff] }
  0xe4   :  { %1052 = vmatpush1.msra.mxu1 %v322_v15  ;;  %976 = vmatprep.subr.mxu0 %v191_v16  ;;  %v290_v51 = vld [vmem:[#allocation5 + $0x4f0] sm:$0xff]  ;;  %v287_v53 = vld [vmem:[#allocation5 + $0x4d8] sm:$0xff] }
  0xe5   :  { %1053 = vmatprep.subr.mxu1 %v319_v17  ;;  %890 = vmatprep.mubr.f32.mxu0 %v129_v18  ;;  %v158_v54 = vld [vmem:[#allocation5 + $0xd0] sm:$0xff]  ;;  %v155_v56 = vld [vmem:[#allocation5 + $0xb8] sm:$0xff] }
  0xe6   :  { %977 = vmatpush1.msra.mxu0 %v190_v19  ;;  %1054 = vmatpush1.msra.mxu1 %v318_v20  ;;  %v286_v55 = vld [vmem:[#allocation5 + $0x4d0] sm:$0xff]  ;;  %v283_v57 = vld [vmem:[#allocation5 + $0x4b8] sm:$0xff] }
  0xe7   :  { %891 = vmatmul.mubr.f32.gmra.mxu0 %v128_v21  ;;  %978 = vmatprep.subr.mxu0 %v187_v22  ;;  %v154_v58 = vld [vmem:[#allocation5 + $0xb0] sm:$0xff]  ;;  %v151_v60 = vld [vmem:[#allocation5 + $0x98] sm:$0xff] }
  0xe8   :  { %1055 = vmatprep.subr.mxu1 %v315_v23  ;;  %967 = vmatprep.mubr.f32.mxu1 %v131_v24  ;;  %v282_v59 = vld [vmem:[#allocation5 + $0x4b0] sm:$0xff]  ;;  %v279_v61 = vld [vmem:[#allocation5 + $0x498] sm:$0xff] }
  0xe9   :  { %979 = vmatpush1.msra.mxu0 %v186_v25  ;;  %1056 = vmatpush1.msra.mxu1 %v314_v26  ;;  %v150_v62 = vld [vmem:[#allocation5 + $0x90] sm:$0xff]  ;;  %v147_v0 = vld [vmem:[#allocation5 + $0x78] sm:$0xff] }
  0xea   :  { %980 = vmatprep.subr.mxu0 %v183_v27  ;;  %968 = vmatmul.mubr.f32.gmra.mxu1 %v130_v28  ;;  %v278_v63 = vld [vmem:[#allocation5 + $0x490] sm:$0xff]  ;;  %v275_v1 = vld [vmem:[#allocation5 + $0x478] sm:$0xff] }
  0xeb   :  { %1057 = vmatprep.subr.mxu1 %v311_v29  ;;  %981 = vmatpush1.msra.mxu0 %v182_v30  ;;  %v146_v2 = vld [vmem:[#allocation5 + $0x70] sm:$0xff]  ;;  %v143_v4 = vld [vmem:[#allocation5 + $0x58] sm:$0xff] }
  0xec   :  { %1058 = vmatpush1.msra.mxu1 %v310_v31  ;;  %982 = vmatprep.subr.mxu0 %v179_v32  ;;  %v274_v3 = vld [vmem:[#allocation5 + $0x470] sm:$0xff]  ;;  %v271_v5 = vld [vmem:[#allocation5 + $0x458] sm:$0xff] }
  0xed   :  { %1059 = vmatprep.subr.mxu1 %v307_v33  ;;  %983 = vmatpush1.msra.mxu0 %v178_v34  ;;  %v142_v6 = vld [vmem:[#allocation5 + $0x50] sm:$0xff]  ;;  %v139_v8 = vld [vmem:[#allocation5 + $0x38] sm:$0xff] }
  0xee   :  { %1060 = vmatpush1.msra.mxu1 %v306_v35  ;;  %984 = vmatprep.subr.mxu0 %v175_v36  ;;  %v270_v7 = vld [vmem:[#allocation5 + $0x450] sm:$0xff]  ;;  %v267_v9 = vld [vmem:[#allocation5 + $0x438] sm:$0xff] }
  0xef   :  { %1061 = vmatprep.subr.mxu1 %v303_v37  ;;  %985 = vmatpush1.msra.mxu0 %v174_v38  ;;  %v138_v10 = vld [vmem:[#allocation5 + $0x30] sm:$0xff]  ;;  %v135_v12 = vld [vmem:[#allocation5 + $0x18] sm:$0xff] }
  0xf0   :  { %1062 = vmatpush1.msra.mxu1 %v302_v39  ;;  %986 = vmatprep.subr.mxu0 %v171_v40  ;;  %v266_v11 = vld [vmem:[#allocation5 + $0x430] sm:$0xff]  ;;  %v263_v13 = vld [vmem:[#allocation5 + $0x418] sm:$0xff] }
  0xf1   :  { %1063 = vmatprep.subr.mxu1 %v299_v41  ;;  %987 = vmatpush1.msra.mxu0 %v170_v42  ;;  %v134_v14 = vld [vmem:[#allocation5 + $0x10] sm:$0xff]  ;;  %v259_v16 = vld [vmem:[#allocation5 + $0x3f8] sm:$0xff] }
  0xf2   :  { %1064 = vmatpush1.msra.mxu1 %v298_v43  ;;  %988 = vmatprep.subr.mxu0 %v167_v44  ;;  %v262_v15 = vld [vmem:[#allocation5 + $0x410] sm:$0xff]  ;;  %v387_v17 = vld [vmem:[#allocation5 + $0x7f8] sm:$0xff] }
  0xf3   :  { %1065 = vmatprep.subr.mxu1 %v295_v45  ;;  %989 = vmatpush1.msra.mxu0 %v166_v46  ;;  %v258_v18 = vld [vmem:[#allocation5 + $0x3f0] sm:$0xff]  ;;  %v255_v20 = vld [vmem:[#allocation5 + $0x3d8] sm:$0xff] }
  0xf4   :  { %1066 = vmatpush1.msra.mxu1 %v294_v47  ;;  %990 = vmatprep.subr.mxu0 %v163_v48  ;;  %v386_v19 = vld [vmem:[#allocation5 + $0x7f0] sm:$0xff]  ;;  %v383_v21 = vld [vmem:[#allocation5 + $0x7d8] sm:$0xff] }
  0xf5   :  { %1067 = vmatprep.subr.mxu1 %v291_v49  ;;  %991 = vmatpush1.msra.mxu0 %v162_v50  ;;  %v254_v22 = vld [vmem:[#allocation5 + $0x3d0] sm:$0xff]  ;;  %v251_v24 = vld [vmem:[#allocation5 + $0x3b8] sm:$0xff] }
  0xf6   :  { %1068 = vmatpush1.msra.mxu1 %v290_v51  ;;  %992 = vmatprep.subr.mxu0 %v159_v52  ;;  %v382_v23 = vld [vmem:[#allocation5 + $0x7d0] sm:$0xff]  ;;  %v379_v25 = vld [vmem:[#allocation5 + $0x7b8] sm:$0xff] }
  0xf7   :  { %1069 = vmatprep.subr.mxu1 %v287_v53  ;;  %993 = vmatpush1.msra.mxu0 %v158_v54  ;;  %v250_v26 = vld [vmem:[#allocation5 + $0x3b0] sm:$0xff]  ;;  %v247_v28 = vld [vmem:[#allocation5 + $0x398] sm:$0xff] }
  0xf8   :  { %1070 = vmatpush1.msra.mxu1 %v286_v55  ;;  %994 = vmatprep.subr.mxu0 %v155_v56  ;;  %v378_v27 = vld [vmem:[#allocation5 + $0x7b0] sm:$0xff]  ;;  %v375_v29 = vld [vmem:[#allocation5 + $0x798] sm:$0xff] }
  0xf9   :  { %1071 = vmatprep.subr.mxu1 %v283_v57  ;;  %995 = vmatpush1.msra.mxu0 %v154_v58  ;;  %v246_v30 = vld [vmem:[#allocation5 + $0x390] sm:$0xff]  ;;  %v243_v32 = vld [vmem:[#allocation5 + $0x378] sm:$0xff] }
  0xfa   :  { %1072 = vmatpush1.msra.mxu1 %v282_v59  ;;  %996 = vmatprep.subr.mxu0 %v151_v60  ;;  %v374_v31 = vld [vmem:[#allocation5 + $0x790] sm:$0xff]  ;;  %v371_v33 = vld [vmem:[#allocation5 + $0x778] sm:$0xff] }
  0xfb   :  { %1073 = vmatprep.subr.mxu1 %v279_v61  ;;  %997 = vmatpush1.msra.mxu0 %v150_v62  ;;  %v242_v34 = vld [vmem:[#allocation5 + $0x370] sm:$0xff]  ;;  %v239_v36 = vld [vmem:[#allocation5 + $0x358] sm:$0xff] }
  0xfc   :  { %1074 = vmatpush1.msra.mxu1 %v278_v63  ;;  %998 = vmatprep.subr.mxu0 %v147_v0  ;;  %v370_v35 = vld [vmem:[#allocation5 + $0x770] sm:$0xff]  ;;  %v367_v37 = vld [vmem:[#allocation5 + $0x758] sm:$0xff] }
  0xfd   :  { %1075 = vmatprep.subr.mxu1 %v275_v1  ;;  %999 = vmatpush1.msra.mxu0 %v146_v2  ;;  %v238_v38 = vld [vmem:[#allocation5 + $0x350] sm:$0xff]  ;;  %v235_v40 = vld [vmem:[#allocation5 + $0x338] sm:$0xff] }
  0xfe   :  { %1076 = vmatpush1.msra.mxu1 %v274_v3  ;;  %1000 = vmatprep.subr.mxu0 %v143_v4  ;;  %v366_v39 = vld [vmem:[#allocation5 + $0x750] sm:$0xff]  ;;  %v363_v41 = vld [vmem:[#allocation5 + $0x738] sm:$0xff] }
  0xff   :  { %1077 = vmatprep.subr.mxu1 %v271_v5  ;;  %1001 = vmatpush1.msra.mxu0 %v142_v6  ;;  %v234_v42 = vld [vmem:[#allocation5 + $0x330] sm:$0xff]  ;;  %v231_v44 = vld [vmem:[#allocation5 + $0x318] sm:$0xff] }
 0x100   :  { %1078 = vmatpush1.msra.mxu1 %v270_v7  ;;  %1002 = vmatprep.subr.mxu0 %v139_v8  ;;  %v362_v43 = vld [vmem:[#allocation5 + $0x730] sm:$0xff]  ;;  %v359_v45 = vld [vmem:[#allocation5 + $0x718] sm:$0xff] }
 0x101   :  { %1079 = vmatprep.subr.mxu1 %v267_v9  ;;  %1003 = vmatpush1.msra.mxu0 %v138_v10  ;;  %v230_v46 = vld [vmem:[#allocation5 + $0x310] sm:$0xff]  ;;  %v227_v48 = vld [vmem:[#allocation5 + $0x2f8] sm:$0xff] }
 0x102   :  { %1080 = vmatpush1.msra.mxu1 %v266_v11  ;;  %1004 = vmatprep.subr.mxu0 %v135_v12  ;;  %v358_v47 = vld [vmem:[#allocation5 + $0x710] sm:$0xff]  ;;  %v355_v49 = vld [vmem:[#allocation5 + $0x6f8] sm:$0xff] }
 0x103   :  { %1081 = vmatprep.subr.mxu1 %v263_v13  ;;  %1005 = vmatpush1.msra.mxu0 %v134_v14  ;;  %v226_v50 = vld [vmem:[#allocation5 + $0x2f0] sm:$0xff]  ;;  %v223_v52 = vld [vmem:[#allocation5 + $0x2d8] sm:$0xff] }
 0x104   :  { %1082 = vmatpush1.msra.mxu1 %v262_v15  ;;  %1006 = vmatprep.subr.mxu0 %v259_v16  ;;  %v354_v51 = vld [vmem:[#allocation5 + $0x6f0] sm:$0xff]  ;;  %v351_v53 = vld [vmem:[#allocation5 + $0x6d8] sm:$0xff] }
 0x105   :  { %1083 = vmatprep.subr.mxu1 %v387_v17  ;;  %1007 = vmatpush2.msra.mxu0 %v258_v18  ;;  %v222_v54 = vld [vmem:[#allocation5 + $0x2d0] sm:$0xff]  ;;  %v219_v56 = vld [vmem:[#allocation5 + $0x2b8] sm:$0xff]  ;;  %v1829_v17 = vld [vmem:[#allocation2 + $0x8] sm:$0xff] }
 0x106   :  { %1084 = vmatpush2.msra.mxu1 %v386_v19  ;;  %1008 = vmatprep.subr.mxu0 %v255_v20  ;;  %v350_v55 = vld [vmem:[#allocation5 + $0x6d0] sm:$0xff]  ;;  %v347_v57 = vld [vmem:[#allocation5 + $0x6b8] sm:$0xff]  ;;  %v1830_v19 = vld [vmem:[#allocation2] sm:$0xff] }
 0x107   :  { %1085 = vmatprep.subr.mxu1 %v383_v21  ;;  %1009 = vmatpush2.msra.mxu0 %v254_v22  ;;  %v218_v58 = vld [vmem:[#allocation5 + $0x2b0] sm:$0xff]  ;;  %v215_v60 = vld [vmem:[#allocation5 + $0x298] sm:$0xff] }
 0x108   :  { %1086 = vmatpush2.msra.mxu1 %v382_v23  ;;  %1010 = vmatprep.subr.mxu0 %v251_v24  ;;  %v346_v59 = vld [vmem:[#allocation5 + $0x6b0] sm:$0xff]  ;;  %v343_v61 = vld [vmem:[#allocation5 + $0x698] sm:$0xff] }
 0x109   :  { %1087 = vmatprep.subr.mxu1 %v379_v25  ;;  %1011 = vmatpush2.msra.mxu0 %v250_v26  ;;  %v214_v62 = vld [vmem:[#allocation5 + $0x290] sm:$0xff]  ;;  %v211_v0 = vld [vmem:[#allocation5 + $0x278] sm:$0xff] }
 0x10a   :  { %1088 = vmatpush2.msra.mxu1 %v378_v27  ;;  %1012 = vmatprep.subr.mxu0 %v247_v28  ;;  %v342_v63 = vld [vmem:[#allocation5 + $0x690] sm:$0xff]  ;;  %v339_v1 = vld [vmem:[#allocation5 + $0x678] sm:$0xff] }
 0x10b   :  { %1089 = vmatprep.subr.mxu1 %v375_v29  ;;  %1013 = vmatpush2.msra.mxu0 %v246_v30  ;;  %v210_v2 = vld [vmem:[#allocation5 + $0x270] sm:$0xff]  ;;  %v207_v4 = vld [vmem:[#allocation5 + $0x258] sm:$0xff] }
 0x10c   :  { %1090 = vmatpush2.msra.mxu1 %v374_v31  ;;  %1014 = vmatprep.subr.mxu0 %v243_v32  ;;  %v338_v3 = vld [vmem:[#allocation5 + $0x670] sm:$0xff]  ;;  %v335_v5 = vld [vmem:[#allocation5 + $0x658] sm:$0xff] }
 0x10d   :  { %1091 = vmatprep.subr.mxu1 %v371_v33  ;;  %1015 = vmatpush2.msra.mxu0 %v242_v34  ;;  %v206_v6 = vld [vmem:[#allocation5 + $0x250] sm:$0xff]  ;;  %v203_v8 = vld [vmem:[#allocation5 + $0x238] sm:$0xff] }
 0x10e   :  { %1092 = vmatpush2.msra.mxu1 %v370_v35  ;;  %1016 = vmatprep.subr.mxu0 %v239_v36  ;;  %v334_v7 = vld [vmem:[#allocation5 + $0x650] sm:$0xff]  ;;  %v331_v9 = vld [vmem:[#allocation5 + $0x638] sm:$0xff] }
 0x10f   :  { %1093 = vmatprep.subr.mxu1 %v367_v37  ;;  %1017 = vmatpush2.msra.mxu0 %v238_v38  ;;  %v202_v10 = vld [vmem:[#allocation5 + $0x230] sm:$0xff]  ;;  %v199_v12 = vld [vmem:[#allocation5 + $0x218] sm:$0xff] }
 0x110   :  { %1094 = vmatpush2.msra.mxu1 %v366_v39  ;;  %1018 = vmatprep.subr.mxu0 %v235_v40  ;;  %v330_v11 = vld [vmem:[#allocation5 + $0x630] sm:$0xff]  ;;  %v327_v13 = vld [vmem:[#allocation5 + $0x618] sm:$0xff] }
 0x111   :  { %1095 = vmatprep.subr.mxu1 %v363_v41  ;;  %1019 = vmatpush2.msra.mxu0 %v234_v42  ;;  %v198_v14 = vld [vmem:[#allocation5 + $0x210] sm:$0xff]  ;;  %v451_v16 = vld [vmem:[#allocation5 + $0x9f8] sm:$0xff] }
 0x112   :  { %1096 = vmatpush2.msra.mxu1 %v362_v43  ;;  %1020 = vmatprep.subr.mxu0 %v231_v44  ;;  %v326_v15 = vld [vmem:[#allocation5 + $0x610] sm:$0xff]  ;;  %v579_v18 = vld [vmem:[#allocation5 + $0xdf8] sm:$0xff] }
 0x113   :  { %1097 = vmatprep.subr.mxu1 %v359_v45  ;;  %1021 = vmatpush2.msra.mxu0 %v230_v46  ;;  %v450_v20 = vld [vmem:[#allocation5 + $0x9f0] sm:$0xff]  ;;  %v1831_v22 = vld [vmem:[#allocation2 + $0x18] sm:$0xff] }
 0x114   :  { %1098 = vmatpush2.msra.mxu1 %v358_v47  ;;  %1022 = vmatprep.subr.mxu0 %v227_v48  ;;  %v578_v21 = vld [vmem:[#allocation5 + $0xdf0] sm:$0xff]  ;;  %v447_v23 = vld [vmem:[#allocation5 + $0x9d8] sm:$0xff] }
 0x115   :  { %1099 = vmatprep.subr.mxu1 %v355_v49  ;;  %1023 = vmatpush2.msra.mxu0 %v226_v50  ;;  %v575_v24 = vld [vmem:[#allocation5 + $0xdd8] sm:$0xff]  ;;  %v1832_v25 = vld [vmem:[#allocation2 + $0x10] sm:$0xff] }
 0x116   :  { %1100 = vmatpush2.msra.mxu1 %v354_v51  ;;  %1024 = vmatprep.subr.mxu0 %v223_v52  ;;  %v446_v26 = vld [vmem:[#allocation5 + $0x9d0] sm:$0xff]  ;;  %v443_v28 = vld [vmem:[#allocation5 + $0x9b8] sm:$0xff] }
 0x117   :  { %1101 = vmatprep.subr.mxu1 %v351_v53  ;;  %1025 = vmatpush2.msra.mxu0 %v222_v54  ;;  %v574_v27 = vld [vmem:[#allocation5 + $0xdd0] sm:$0xff]  ;;  %v571_v29 = vld [vmem:[#allocation5 + $0xdb8] sm:$0xff] }
 0x118   :  { %1102 = vmatpush2.msra.mxu1 %v350_v55  ;;  %1026 = vmatprep.subr.mxu0 %v219_v56  ;;  %v442_v30 = vld [vmem:[#allocation5 + $0x9b0] sm:$0xff]  ;;  %v439_v32 = vld [vmem:[#allocation5 + $0x998] sm:$0xff] }
 0x119   :  { %1103 = vmatprep.subr.mxu1 %v347_v57  ;;  %1027 = vmatpush2.msra.mxu0 %v218_v58  ;;  %v570_v31 = vld [vmem:[#allocation5 + $0xdb0] sm:$0xff]  ;;  %v567_v33 = vld [vmem:[#allocation5 + $0xd98] sm:$0xff] }
 0x11a   :  { %1104 = vmatpush2.msra.mxu1 %v346_v59  ;;  %1028 = vmatprep.subr.mxu0 %v215_v60  ;;  %v438_v34 = vld [vmem:[#allocation5 + $0x990] sm:$0xff]  ;;  %v435_v36 = vld [vmem:[#allocation5 + $0x978] sm:$0xff] }
 0x11b   :  { %1105 = vmatprep.subr.mxu1 %v343_v61  ;;  %1029 = vmatpush2.msra.mxu0 %v214_v62  ;;  %v566_v35 = vld [vmem:[#allocation5 + $0xd90] sm:$0xff]  ;;  %v563_v37 = vld [vmem:[#allocation5 + $0xd78] sm:$0xff] }
 0x11c   :  { %1106 = vmatpush2.msra.mxu1 %v342_v63  ;;  %1030 = vmatprep.subr.mxu0 %v211_v0  ;;  %v434_v38 = vld [vmem:[#allocation5 + $0x970] sm:$0xff]  ;;  %v431_v40 = vld [vmem:[#allocation5 + $0x958] sm:$0xff] }
 0x11d   :  { %1107 = vmatprep.subr.mxu1 %v339_v1  ;;  %1031 = vmatpush2.msra.mxu0 %v210_v2  ;;  %v562_v39 = vld [vmem:[#allocation5 + $0xd70] sm:$0xff]  ;;  %v559_v41 = vld [vmem:[#allocation5 + $0xd58] sm:$0xff] }
 0x11e   :  { %1108 = vmatpush2.msra.mxu1 %v338_v3  ;;  %1032 = vmatprep.subr.mxu0 %v207_v4  ;;  %v430_v42 = vld [vmem:[#allocation5 + $0x950] sm:$0xff]  ;;  %v427_v44 = vld [vmem:[#allocation5 + $0x938] sm:$0xff] }
 0x11f   :  { %1109 = vmatprep.subr.mxu1 %v335_v5  ;;  %1033 = vmatpush2.msra.mxu0 %v206_v6  ;;  %v558_v43 = vld [vmem:[#allocation5 + $0xd50] sm:$0xff]  ;;  %v555_v45 = vld [vmem:[#allocation5 + $0xd38] sm:$0xff] }
 0x120   :  { %1110 = vmatpush2.msra.mxu1 %v334_v7  ;;  %1034 = vmatprep.subr.mxu0 %v203_v8  ;;  %v426_v46 = vld [vmem:[#allocation5 + $0x930] sm:$0xff]  ;;  %v423_v48 = vld [vmem:[#allocation5 + $0x918] sm:$0xff] }
 0x121   :  { %1111 = vmatprep.subr.mxu1 %v331_v9  ;;  %1035 = vmatpush2.msra.mxu0 %v202_v10  ;;  %v554_v47 = vld [vmem:[#allocation5 + $0xd30] sm:$0xff]  ;;  %v551_v49 = vld [vmem:[#allocation5 + $0xd18] sm:$0xff] }
 0x122   :  { %1112 = vmatpush2.msra.mxu1 %v330_v11  ;;  %1036 = vmatprep.subr.mxu0 %v199_v12  ;;  %v422_v50 = vld [vmem:[#allocation5 + $0x910] sm:$0xff]  ;;  %v419_v52 = vld [vmem:[#allocation5 + $0x8f8] sm:$0xff] }
 0x123   :  { %1113 = vmatprep.subr.mxu1 %v327_v13  ;;  %1037 = vmatpush2.msra.mxu0 %v198_v14  ;;  %v550_v51 = vld [vmem:[#allocation5 + $0xd10] sm:$0xff]  ;;  %v547_v53 = vld [vmem:[#allocation5 + $0xcf8] sm:$0xff] }
 0x124   :  { %1038 = vmatprep.mubr.f32.mxu0 %v1829_v17  ;;  %1114 = vmatpush2.msra.mxu1 %v326_v15  ;;  %v418_v54 = vld [vmem:[#allocation5 + $0x8f0] sm:$0xff]  ;;  %v415_v56 = vld [vmem:[#allocation5 + $0x8d8] sm:$0xff] }
 0x125   :  { %1039 = vmatmul.mubr.f32.vlgmr.msra.gmra.mxu0 %v1830_v19  ;;  %1115 = vmatprep.mubr.f32.mxu1 %v1831_v22  ;;  %v546_v55 = vld [vmem:[#allocation5 + $0xcf0] sm:$0xff]  ;;  %v543_v57 = vld [vmem:[#allocation5 + $0xcd8] sm:$0xff] }
 0x126   :  { %1128 = vmatprep.subr.mxu0 %v451_v16  ;;  %1205 = vmatprep.subr.mxu1 %v579_v18  ;;  %v414_v58 = vld [vmem:[#allocation5 + $0x8d0] sm:$0xff]  ;;  %v411_v60 = vld [vmem:[#allocation5 + $0x8b8] sm:$0xff] }
 0x127   :  { %1116 = vmatmul.mubr.f32.vlgmr.msra.gmra.mxu1 %v1832_v25  ;;  %1129 = vmatpush1.msra.mxu0 %v450_v20  ;;  %v542_v59 = vld [vmem:[#allocation5 + $0xcd0] sm:$0xff]  ;;  %v539_v61 = vld [vmem:[#allocation5 + $0xcb8] sm:$0xff] }
 0x128   :  { %1206 = vmatpush1.msra.mxu1 %v578_v21  ;;  %1130 = vmatprep.subr.mxu0 %v447_v23  ;;  %v410_v62 = vld [vmem:[#allocation5 + $0x8b0] sm:$0xff]  ;;  %v407_v0 = vld [vmem:[#allocation5 + $0x898] sm:$0xff] }
 0x129   :  { %1207 = vmatprep.subr.mxu1 %v575_v24  ;;  %1131 = vmatpush1.msra.mxu0 %v446_v26  ;;  %v538_v63 = vld [vmem:[#allocation5 + $0xcb0] sm:$0xff]  ;;  %v535_v1 = vld [vmem:[#allocation5 + $0xc98] sm:$0xff] }
 0x12a   :  { %1208 = vmatpush1.msra.mxu1 %v574_v27  ;;  %1132 = vmatprep.subr.mxu0 %v443_v28  ;;  %v406_v2 = vld [vmem:[#allocation5 + $0x890] sm:$0xff]  ;;  %v403_v4 = vld [vmem:[#allocation5 + $0x878] sm:$0xff] }
 0x12b   :  { %1209 = vmatprep.subr.mxu1 %v571_v29  ;;  %1133 = vmatpush1.msra.mxu0 %v442_v30  ;;  %v534_v3 = vld [vmem:[#allocation5 + $0xc90] sm:$0xff]  ;;  %v531_v5 = vld [vmem:[#allocation5 + $0xc78] sm:$0xff] }
 0x12c   :  { %1210 = vmatpush1.msra.mxu1 %v570_v31  ;;  %1134 = vmatprep.subr.mxu0 %v439_v32  ;;  %v402_v6 = vld [vmem:[#allocation5 + $0x870] sm:$0xff]  ;;  %v399_v8 = vld [vmem:[#allocation5 + $0x858] sm:$0xff] }
 0x12d   :  { %1211 = vmatprep.subr.mxu1 %v567_v33  ;;  %1135 = vmatpush1.msra.mxu0 %v438_v34  ;;  %v530_v7 = vld [vmem:[#allocation5 + $0xc70] sm:$0xff]  ;;  %v527_v9 = vld [vmem:[#allocation5 + $0xc58] sm:$0xff] }
 0x12e   :  { %1212 = vmatpush1.msra.mxu1 %v566_v35  ;;  %1136 = vmatprep.subr.mxu0 %v435_v36  ;;  %v398_v10 = vld [vmem:[#allocation5 + $0x850] sm:$0xff]  ;;  %v395_v12 = vld [vmem:[#allocation5 + $0x838] sm:$0xff] }
 0x12f   :  { %1213 = vmatprep.subr.mxu1 %v563_v37  ;;  %1137 = vmatpush1.msra.mxu0 %v434_v38  ;;  %v526_v11 = vld [vmem:[#allocation5 + $0xc50] sm:$0xff]  ;;  %v523_v13 = vld [vmem:[#allocation5 + $0xc38] sm:$0xff] }
 0x130   :  { %1214 = vmatpush1.msra.mxu1 %v562_v39  ;;  %1138 = vmatprep.subr.mxu0 %v431_v40  ;;  %v394_v14 = vld [vmem:[#allocation5 + $0x830] sm:$0xff]  ;;  %v391_v16 = vld [vmem:[#allocation5 + $0x818] sm:$0xff] }
 0x131   :  { %1215 = vmatprep.subr.mxu1 %v559_v41  ;;  %1139 = vmatpush1.msra.mxu0 %v430_v42  ;;  %v522_v15 = vld [vmem:[#allocation5 + $0xc30] sm:$0xff]  ;;  %v519_v17 = vld [vmem:[#allocation5 + $0xc18] sm:$0xff] }
 0x132   :  { %1216 = vmatpush1.msra.mxu1 %v558_v43  ;;  %1140 = vmatprep.subr.mxu0 %v427_v44  ;;  %v390_v18 = vld [vmem:[#allocation5 + $0x810] sm:$0xff]  ;;  %v515_v20 = vld [vmem:[#allocation5 + $0xbf8] sm:$0xff] }
 0x133   :  { %1217 = vmatprep.subr.mxu1 %v555_v45  ;;  %1141 = vmatpush1.msra.mxu0 %v426_v46  ;;  %v518_v19 = vld [vmem:[#allocation5 + $0xc10] sm:$0xff]  ;;  %v643_v21 = vld [vmem:[#allocation5 + $0xff8] sm:$0xff] }
 0x134   :  { %1218 = vmatpush1.msra.mxu1 %v554_v47  ;;  %1142 = vmatprep.subr.mxu0 %v423_v48  ;;  %v514_v22 = vld [vmem:[#allocation5 + $0xbf0] sm:$0xff]  ;;  %v511_v24 = vld [vmem:[#allocation5 + $0xbd8] sm:$0xff] }
 0x135   :  { %1219 = vmatprep.subr.mxu1 %v551_v49  ;;  %1143 = vmatpush1.msra.mxu0 %v422_v50  ;;  %v642_v23 = vld [vmem:[#allocation5 + $0xff0] sm:$0xff]  ;;  %v639_v25 = vld [vmem:[#allocation5 + $0xfd8] sm:$0xff] }
 0x136   :  { %1220 = vmatpush1.msra.mxu1 %v550_v51  ;;  %1144 = vmatprep.subr.mxu0 %v419_v52  ;;  %v510_v26 = vld [vmem:[#allocation5 + $0xbd0] sm:$0xff]  ;;  %v507_v28 = vld [vmem:[#allocation5 + $0xbb8] sm:$0xff] }
 0x137   :  { %1221 = vmatprep.subr.mxu1 %v547_v53  ;;  %1145 = vmatpush1.msra.mxu0 %v418_v54  ;;  %v638_v27 = vld [vmem:[#allocation5 + $0xfd0] sm:$0xff]  ;;  %v635_v29 = vld [vmem:[#allocation5 + $0xfb8] sm:$0xff] }
 0x138   :  { %1222 = vmatpush1.msra.mxu1 %v546_v55  ;;  %1146 = vmatprep.subr.mxu0 %v415_v56  ;;  %v506_v30 = vld [vmem:[#allocation5 + $0xbb0] sm:$0xff]  ;;  %v503_v32 = vld [vmem:[#allocation5 + $0xb98] sm:$0xff] }
 0x139   :  { %1223 = vmatprep.subr.mxu1 %v543_v57  ;;  %1147 = vmatpush1.msra.mxu0 %v414_v58  ;;  %v634_v31 = vld [vmem:[#allocation5 + $0xfb0] sm:$0xff]  ;;  %v631_v33 = vld [vmem:[#allocation5 + $0xf98] sm:$0xff] }
 0x13a   :  { %1224 = vmatpush1.msra.mxu1 %v542_v59  ;;  %1148 = vmatprep.subr.mxu0 %v411_v60  ;;  %v502_v34 = vld [vmem:[#allocation5 + $0xb90] sm:$0xff]  ;;  %v499_v36 = vld [vmem:[#allocation5 + $0xb78] sm:$0xff] }
 0x13b   :  { %1225 = vmatprep.subr.mxu1 %v539_v61  ;;  %1149 = vmatpush1.msra.mxu0 %v410_v62  ;;  %v630_v35 = vld [vmem:[#allocation5 + $0xf90] sm:$0xff]  ;;  %v627_v37 = vld [vmem:[#allocation5 + $0xf78] sm:$0xff] }
 0x13c   :  { %1226 = vmatpush1.msra.mxu1 %v538_v63  ;;  %1150 = vmatprep.subr.mxu0 %v407_v0  ;;  %v498_v38 = vld [vmem:[#allocation5 + $0xb70] sm:$0xff]  ;;  %v495_v40 = vld [vmem:[#allocation5 + $0xb58] sm:$0xff] }
 0x13d   :  { %1227 = vmatprep.subr.mxu1 %v535_v1  ;;  %1151 = vmatpush1.msra.mxu0 %v406_v2  ;;  %v626_v39 = vld [vmem:[#allocation5 + $0xf70] sm:$0xff]  ;;  %v623_v41 = vld [vmem:[#allocation5 + $0xf58] sm:$0xff] }
 0x13e   :  { %1228 = vmatpush1.msra.mxu1 %v534_v3  ;;  %1152 = vmatprep.subr.mxu0 %v403_v4  ;;  %v494_v42 = vld [vmem:[#allocation5 + $0xb50] sm:$0xff]  ;;  %v491_v44 = vld [vmem:[#allocation5 + $0xb38] sm:$0xff] }
 0x13f   :  { %1229 = vmatprep.subr.mxu1 %v531_v5  ;;  %1153 = vmatpush1.msra.mxu0 %v402_v6  ;;  %v622_v43 = vld [vmem:[#allocation5 + $0xf50] sm:$0xff]  ;;  %v619_v45 = vld [vmem:[#allocation5 + $0xf38] sm:$0xff] }
 0x140   :  { %1230 = vmatpush1.msra.mxu1 %v530_v7  ;;  %1154 = vmatprep.subr.mxu0 %v399_v8  ;;  %v490_v46 = vld [vmem:[#allocation5 + $0xb30] sm:$0xff]  ;;  %v487_v48 = vld [vmem:[#allocation5 + $0xb18] sm:$0xff] }
 0x141   :  { %1231 = vmatprep.subr.mxu1 %v527_v9  ;;  %1155 = vmatpush1.msra.mxu0 %v398_v10  ;;  %v618_v47 = vld [vmem:[#allocation5 + $0xf30] sm:$0xff]  ;;  %v615_v49 = vld [vmem:[#allocation5 + $0xf18] sm:$0xff]  ;;  %v1833_v10 = vld [vmem:[#allocation2 + $0x48] sm:$0xff] }
 0x142   :  { %1232 = vmatpush1.msra.mxu1 %v526_v11  ;;  %1156 = vmatprep.subr.mxu0 %v395_v12  ;;  %v486_v50 = vld [vmem:[#allocation5 + $0xb10] sm:$0xff]  ;;  %v483_v52 = vld [vmem:[#allocation5 + $0xaf8] sm:$0xff]  ;;  %v1834_v12 = vld [vmem:[#allocation2 + $0x40] sm:$0xff] }
 0x143   :  { %1233 = vmatprep.subr.mxu1 %v523_v13  ;;  %1157 = vmatpush1.msra.mxu0 %v394_v14  ;;  %v614_v51 = vld [vmem:[#allocation5 + $0xf10] sm:$0xff]  ;;  %v611_v53 = vld [vmem:[#allocation5 + $0xef8] sm:$0xff] }
 0x144   :  { %1234 = vmatpush1.msra.mxu1 %v522_v15  ;;  %1158 = vmatprep.subr.mxu0 %v391_v16  ;;  %v482_v54 = vld [vmem:[#allocation5 + $0xaf0] sm:$0xff]  ;;  %v479_v56 = vld [vmem:[#allocation5 + $0xad8] sm:$0xff] }
 0x145   :  { %1235 = vmatprep.subr.mxu1 %v519_v17  ;;  %1159 = vmatpush1.msra.mxu0 %v390_v18  ;;  %v610_v55 = vld [vmem:[#allocation5 + $0xef0] sm:$0xff]  ;;  %v607_v57 = vld [vmem:[#allocation5 + $0xed8] sm:$0xff] }
 0x146   :  { %1236 = vmatpush1.msra.mxu1 %v518_v19  ;;  %1160 = vmatprep.subr.mxu0 %v515_v20  ;;  %v478_v58 = vld [vmem:[#allocation5 + $0xad0] sm:$0xff]  ;;  %v475_v60 = vld [vmem:[#allocation5 + $0xab8] sm:$0xff] }
 0x147   :  { %1237 = vmatprep.subr.mxu1 %v643_v21  ;;  %1161 = vmatpush2.msra.mxu0 %v514_v22  ;;  %v606_v59 = vld [vmem:[#allocation5 + $0xed0] sm:$0xff]  ;;  %v603_v61 = vld [vmem:[#allocation5 + $0xeb8] sm:$0xff] }
 0x148   :  { %1238 = vmatpush2.msra.mxu1 %v642_v23  ;;  %1162 = vmatprep.subr.mxu0 %v511_v24  ;;  %v474_v62 = vld [vmem:[#allocation5 + $0xab0] sm:$0xff]  ;;  %v471_v0 = vld [vmem:[#allocation5 + $0xa98] sm:$0xff]  ;;  %v1837_v24 = vld [vmem:[#allocation2 + $0x28] sm:$0xff] }
 0x149   :  { %1239 = vmatprep.subr.mxu1 %v639_v25  ;;  %1163 = vmatpush2.msra.mxu0 %v510_v26  ;;  %v602_v63 = vld [vmem:[#allocation5 + $0xeb0] sm:$0xff]  ;;  %v599_v1 = vld [vmem:[#allocation5 + $0xe98] sm:$0xff] }
 0x14a   :  { %1240 = vmatpush2.msra.mxu1 %v638_v27  ;;  %1164 = vmatprep.subr.mxu0 %v507_v28  ;;  %v470_v2 = vld [vmem:[#allocation5 + $0xa90] sm:$0xff]  ;;  %v467_v4 = vld [vmem:[#allocation5 + $0xa78] sm:$0xff]  ;;  %v1839_v27 = vld [vmem:[#allocation2 + $0x20] sm:$0xff] }
 0x14b   :  { %1241 = vmatprep.subr.mxu1 %v635_v29  ;;  %1165 = vmatpush2.msra.mxu0 %v506_v30  ;;  %v598_v3 = vld [vmem:[#allocation5 + $0xe90] sm:$0xff]  ;;  %v595_v5 = vld [vmem:[#allocation5 + $0xe78] sm:$0xff] }
 0x14c   :  { %1242 = vmatpush2.msra.mxu1 %v634_v31  ;;  %1166 = vmatprep.subr.mxu0 %v503_v32  ;;  %v466_v6 = vld [vmem:[#allocation5 + $0xa70] sm:$0xff]  ;;  %v463_v8 = vld [vmem:[#allocation5 + $0xa58] sm:$0xff]  ;;  %v1841_v32 = vld [vmem:[#allocation2 + $0x68] sm:$0xff] }
 0x14d   :  { %1243 = vmatprep.subr.mxu1 %v631_v33  ;;  %1167 = vmatpush2.msra.mxu0 %v502_v34  ;;  %v594_v7 = vld [vmem:[#allocation5 + $0xe70] sm:$0xff]  ;;  %v591_v9 = vld [vmem:[#allocation5 + $0xe58] sm:$0xff] }
 0x14e   :  { %1244 = vmatpush2.msra.mxu1 %v630_v35  ;;  %1168 = vmatprep.subr.mxu0 %v499_v36  ;;  %v462_v11 = vld [vmem:[#allocation5 + $0xa50] sm:$0xff]  ;;  %v459_v14 = vld [vmem:[#allocation5 + $0xa38] sm:$0xff]  ;;  %v1318_v36 = vld [vmem:[#allocation8 + $0xe0] sm:$0xff] }
 0x14f   :  { %1245 = vmatprep.subr.mxu1 %v627_v37  ;;  %1169 = vmatpush2.msra.mxu0 %v498_v38  ;;  %v590_v13 = vld [vmem:[#allocation5 + $0xe50] sm:$0xff]  ;;  %v587_v15 = vld [vmem:[#allocation5 + $0xe38] sm:$0xff]  ;;  %v1382_v37 = vld [vmem:[#allocation8 + $0x2e0] sm:$0xff] }
 0x150   :  { %1246 = vmatpush2.msra.mxu1 %v626_v39  ;;  %1170 = vmatprep.subr.mxu0 %v495_v40  ;;  %v1835_v16 = vld [vmem:[#allocation2 + $0x58] sm:$0xff]  ;;  %v458_v17 = vld [vmem:[#allocation5 + $0xa30] sm:$0xff]  ;;  %v1843_v38 = vld [vmem:[#allocation2 + $0x60] sm:$0xff] }
 0x151   :  { %1247 = vmatprep.subr.mxu1 %v623_v41  ;;  %1171 = vmatpush2.msra.mxu0 %v494_v42  ;;  %v586_v18 = vld [vmem:[#allocation5 + $0xe30] sm:$0xff]  ;;  %v455_v19 = vld [vmem:[#allocation5 + $0xa18] sm:$0xff] }
 0x152   :  { %1248 = vmatpush2.msra.mxu1 %v622_v43  ;;  %1172 = vmatprep.subr.mxu0 %v491_v44  ;;  %v583_v20 = vld [vmem:[#allocation5 + $0xe18] sm:$0xff]  ;;  %v1836_v21 = vld [vmem:[#allocation2 + $0x50] sm:$0xff] }
 0x153   :  { %1249 = vmatprep.subr.mxu1 %v619_v45  ;;  %1173 = vmatpush2.msra.mxu0 %v490_v46  ;;  %v454_v22 = vld [vmem:[#allocation5 + $0xa10] sm:$0xff]  ;;  %v1838_v25 = vld [vmem:[#allocation2 + $0x38] sm:$0xff]  ;;  %v1314_v46 = vld [vmem:[#allocation8 + $0xc0] sm:$0xff] }
 0x154   :  { %1250 = vmatpush2.msra.mxu1 %v618_v47  ;;  %1174 = vmatprep.subr.mxu0 %v487_v48  ;;  %v582_v23 = vld [vmem:[#allocation5 + $0xe10] sm:$0xff]  ;;  %v1321_v26 = vld [vmem:[#allocation8 + $0xf8] sm:$0xff]  ;;  %v1378_v47 = vld [vmem:[#allocation8 + $0x2c0] sm:$0xff] }
 0x155   :  { %1251 = vmatprep.subr.mxu1 %v615_v49  ;;  %1175 = vmatpush2.msra.mxu0 %v486_v50  ;;  %v1840_v28 = vld [vmem:[#allocation2 + $0x30] sm:$0xff]  ;;  %v1385_v30 = vld [vmem:[#allocation8 + $0x2f8] sm:$0xff] }
 0x156   :  { %1252 = vmatpush2.msra.mxu1 %v614_v51  ;;  %1176 = vmatprep.subr.mxu0 %v483_v52  ;;  %v1320_v29 = vld [vmem:[#allocation8 + $0xf0] sm:$0xff]  ;;  %v1319_v34 = vld [vmem:[#allocation8 + $0xe8] sm:$0xff]  ;;  %v1317_v40 = vld [vmem:[#allocation8 + $0xd8] sm:$0xff] }
 0x157   :  { %1253 = vmatprep.subr.mxu1 %v611_v53  ;;  %1177 = vmatpush2.msra.mxu0 %v482_v54  ;;  %v1384_v31 = vld [vmem:[#allocation8 + $0x2f0] sm:$0xff]  ;;  %v1383_v35 = vld [vmem:[#allocation8 + $0x2e8] sm:$0xff]  ;;  %v1381_v41 = vld [vmem:[#allocation8 + $0x2d8] sm:$0xff] }
 0x158   :  { %1254 = vmatpush2.msra.mxu1 %v610_v55  ;;  %1178 = vmatprep.subr.mxu0 %v479_v56  ;;  %v1842_v33 = vld [vmem:[#allocation2 + $0x78] sm:$0xff]  ;;  %v1844_v39 = vld [vmem:[#allocation2 + $0x70] sm:$0xff]  ;;  %v1310_v54 = vld [vmem:[#allocation8 + $0xa0] sm:$0xff] }
 0x159   :  { %1255 = vmatprep.subr.mxu1 %v607_v57  ;;  %1179 = vmatpush2.msra.mxu0 %v478_v58  ;;  %v1316_v42 = vld [vmem:[#allocation8 + $0xd0] sm:$0xff]  ;;  %v1315_v44 = vld [vmem:[#allocation8 + $0xc8] sm:$0xff]  ;;  %v1313_v48 = vld [vmem:[#allocation8 + $0xb8] sm:$0xff] }
 0x15a   :  { %1256 = vmatpush2.msra.mxu1 %v606_v59  ;;  %1180 = vmatprep.subr.mxu0 %v475_v60  ;;  %v1380_v43 = vld [vmem:[#allocation8 + $0x2d0] sm:$0xff]  ;;  %v1379_v45 = vld [vmem:[#allocation8 + $0x2c8] sm:$0xff]  ;;  %v1377_v49 = vld [vmem:[#allocation8 + $0x2b8] sm:$0xff] }
 0x15b   :  { %1257 = vmatprep.subr.mxu1 %v603_v61  ;;  %1181 = vmatpush2.msra.mxu0 %v474_v62  ;;  %v1312_v50 = vld [vmem:[#allocation8 + $0xb0] sm:$0xff]  ;;  %v1311_v52 = vld [vmem:[#allocation8 + $0xa8] sm:$0xff]  ;;  %v1374_v55 = vld [vmem:[#allocation8 + $0x2a0] sm:$0xff] }
 0x15c   :  { %1258 = vmatpush2.msra.mxu1 %v602_v63  ;;  %1182 = vmatprep.subr.mxu0 %v471_v0  ;;  %v1376_v51 = vld [vmem:[#allocation8 + $0x2b0] sm:$0xff]  ;;  %v1375_v53 = vld [vmem:[#allocation8 + $0x2a8] sm:$0xff]  ;;  %v1309_v56 = vld [vmem:[#allocation8 + $0x98] sm:$0xff] }
 0x15d   :  { %1259 = vmatprep.subr.mxu1 %v599_v1  ;;  %1183 = vmatpush2.msra.mxu0 %v470_v2  ;;  %v1373_v57 = vld [vmem:[#allocation8 + $0x298] sm:$0xff]  ;;  %v1308_v58 = vld [vmem:[#allocation8 + $0x90] sm:$0xff]  ;;  %v1307_v60 = vld [vmem:[#allocation8 + $0x88] sm:$0xff] }
 0x15e   :  { %1260 = vmatpush2.msra.mxu1 %v598_v3  ;;  %1184 = vmatprep.subr.mxu0 %v467_v4  ;;  %v1372_v59 = vld [vmem:[#allocation8 + $0x290] sm:$0xff]  ;;  %v1371_v61 = vld [vmem:[#allocation8 + $0x288] sm:$0xff]  ;;  %v1306_v62 = vld [vmem:[#allocation8 + $0x80] sm:$0xff] }
 0x15f   :  { %1261 = vmatprep.subr.mxu1 %v595_v5  ;;  %1044 = vmatprep.mubr.f32.mxu0 %v1833_v10  ;;  %v1370_v63 = vld [vmem:[#allocation8 + $0x280] sm:$0xff]  ;;  %v1305_v0 = vld [vmem:[#allocation8 + $0x78] sm:$0xff]  ;;  %v1304_v2 = vld [vmem:[#allocation8 + $0x70] sm:$0xff] }
 0x160   :  { %1185 = vmatpush2.msra.mxu0 %v466_v6  ;;  %1262 = vmatpush2.msra.mxu1 %v594_v7  ;;  %v1369_v1 = vld [vmem:[#allocation8 + $0x278] sm:$0xff]  ;;  %v1368_v3 = vld [vmem:[#allocation8 + $0x270] sm:$0xff]  ;;  %v1303_v4 = vld [vmem:[#allocation8 + $0x68] sm:$0xff] }
 0x161   :  { %1045 = vmatmul.mubr.f32.gmra.mxu0 %v1834_v12  ;;  %1186 = vmatprep.subr.mxu0 %v463_v8  ;;  %v1367_v5 = vld [vmem:[#allocation8 + $0x268] sm:$0xff]  ;;  %v1302_v6 = vld [vmem:[#allocation8 + $0x60] sm:$0xff]  ;;  %v1301_v8 = vld [vmem:[#allocation8 + $0x58] sm:$0xff] }
 0x162   :  { %1263 = vmatprep.subr.mxu1 %v591_v9  ;;  %1121 = vmatprep.mubr.f32.mxu1 %v1835_v16  ;;  %v1366_v7 = vld [vmem:[#allocation8 + $0x260] sm:$0xff]  ;;  %v1365_v9 = vld [vmem:[#allocation8 + $0x258] sm:$0xff]  ;;  %v1300_v10 = vld [vmem:[#allocation8 + $0x50] sm:$0xff] }
 0x163   :  { %1187 = vmatpush2.msra.mxu0 %v462_v11  ;;  %1264 = vmatpush2.msra.mxu1 %v590_v13  ;;  %v1364_v11 = vld [vmem:[#allocation8 + $0x250] sm:$0xff]  ;;  %v1299_v12 = vld [vmem:[#allocation8 + $0x48] sm:$0xff]  ;;  %v1297_v16 = vld [vmem:[#allocation8 + $0x38] sm:$0xff] }
 0x164   :  { %1188 = vmatprep.subr.mxu0 %v459_v14  ;;  %1122 = vmatmul.mubr.f32.gmra.mxu1 %v1836_v21  ;;  %v1363_v13 = vld [vmem:[#allocation8 + $0x248] sm:$0xff]  ;;  %v1298_v14 = vld [vmem:[#allocation8 + $0x40] sm:$0xff] }
 0x165   :  { %1265 = vmatprep.subr.mxu1 %v587_v15  ;;  %1189 = vmatpush2.msra.mxu0 %v458_v17  ;;  %v1362_v15 = vld [vmem:[#allocation8 + $0x240] sm:$0xff]  ;;  %v1361_v17 = vld [vmem:[#allocation8 + $0x238] sm:$0xff]  ;;  %v1359_v21 = vld [vmem:[#allocation8 + $0x228] sm:$0xff] }
 0x166   :  { %1266 = vmatpush2.msra.mxu1 %v586_v18  ;;  %1190 = vmatprep.subr.mxu0 %v455_v19  ;;  %v1296_v18 = vld [vmem:[#allocation8 + $0x30] sm:$0xff] }
 0x167   :  { %1267 = vmatprep.subr.mxu1 %v583_v20  ;;  %1191 = vmatpush2.msra.mxu0 %v454_v22  ;;  %v1360_v19 = vld [vmem:[#allocation8 + $0x230] sm:$0xff]  ;;  %v1295_v20 = vld [vmem:[#allocation8 + $0x28] sm:$0xff]  ;;  %v1294_v22 = vld [vmem:[#allocation8 + $0x20] sm:$0xff] }
 0x168   :  { %1192 = vmatprep.mubr.f32.mxu0 %v1837_v24  ;;  %1268 = vmatpush2.msra.mxu1 %v582_v23  ;;  %v1358_v23 = vld [vmem:[#allocation8 + $0x220] sm:$0xff]  ;;  %v1293_v24 = vld [vmem:[#allocation8 + $0x18] sm:$0xff] }
 0x169   :  { %1269 = vmatprep.mubr.f32.mxu1 %v1838_v25  ;;  %1193 = vmatmul.mubr.f32.vlgmr.msra.gmra.mxu0 %v1839_v27  ;;  %v1357_v25 = vld [vmem:[#allocation8 + $0x218] sm:$0xff]  ;;  %v1356_v27 = vld [vmem:[#allocation8 + $0x210] sm:$0xff] }
 0x16a   :  { %1270 = vmatmul.mubr.f32.vlgmr.msra.gmra.mxu1 %v1840_v28  ;;  %1198 = vmatprep.mubr.f32.mxu0 %v1841_v32  ;;  %v1291_v28 = vld [vmem:[#allocation8 + $0x8] sm:$0xff]  ;;  %v1353_v32 = vld [vmem:[#allocation8 + $0x1f8] sm:$0xff] }
 0x16b   :  { %1275 = vmatprep.mubr.f32.mxu1 %v1842_v33  ;;  %1430 = vmatprep.subr.mxu0 %v1321_v26  ;;  %v1292_v26 = vld [vmem:[#allocation8 + $0x10] sm:$0xff]  ;;  %v1417_v33 = vld [vmem:[#allocation8 + $0x3f8] sm:$0xff] }
 0x16c   :  { %1507 = vmatprep.subr.mxu1 %v1385_v30  ;;  %1431 = vmatpush1.msra.mxu0 %v1320_v29  ;;  %v1355_v29 = vld [vmem:[#allocation8 + $0x208] sm:$0xff]  ;;  %v1290_v30 = vld [vmem:[#allocation8] sm:$0xff] }
 0x16d   :  { %1508 = vmatpush1.msra.mxu1 %v1384_v31  ;;  %1199 = vmatmul.mubr.f32.gmra.mxu0 %v1843_v38  ;;  %v1354_v31 = vld [vmem:[#allocation8 + $0x200] sm:$0xff]  ;;  %v646_v38 = vlaneseq }
 0x16e   :  { %1276 = vmatmul.mubr.f32.gmra.mxu1 %v1844_v39  ;;  %1432 = vmatprep.subr.mxu0 %v1319_v34  ;;  %v1352_v34 = vld [vmem:[#allocation8 + $0x1f0] sm:$0xff]  ;;  %v1350_v39 = vld [vmem:[#allocation8 + $0x1e0] sm:$0xff] }
 0x16f   :  { %1509 = vmatprep.subr.mxu1 %v1383_v35  ;;  %1433 = vmatpush1.msra.mxu0 %v1318_v36  ;;  %v1416_v35 = vld [vmem:[#allocation8 + $0x3f0] sm:$0xff]  ;;  %v1351_v36 = vld [vmem:[#allocation8 + $0x1e8] sm:$0xff] }
 0x170   :  { %1510 = vmatpush1.msra.mxu1 %v1382_v37  ;;  %1434 = vmatprep.subr.mxu0 %v1317_v40  ;;  %v1415_v37 = vld [vmem:[#allocation8 + $0x3e8] sm:$0xff]  ;;  %v1414_v40 = vld [vmem:[#allocation8 + $0x3e0] sm:$0xff] }
 0x171   :  { %1511 = vmatprep.subr.mxu1 %v1381_v41  ;;  %1435 = vmatpush1.msra.mxu0 %v1316_v42  ;;  %v1349_v41 = vld [vmem:[#allocation8 + $0x1d8] sm:$0xff] }
 0x172   :  { %1512 = vmatpush1.msra.mxu1 %v1380_v43  ;;  %1436 = vmatprep.subr.mxu0 %v1315_v44  ;;  %v1413_v42 = vld [vmem:[#allocation8 + $0x3d8] sm:$0xff]  ;;  %v1348_v43 = vld [vmem:[#allocation8 + $0x1d0] sm:$0xff] }
 0x173   :  { %1513 = vmatprep.subr.mxu1 %v1379_v45  ;;  %1437 = vmatpush1.msra.mxu0 %v1314_v46  ;;  %v1412_v44 = vld [vmem:[#allocation8 + $0x3d0] sm:$0xff]  ;;  %v1347_v45 = vld [vmem:[#allocation8 + $0x1c8] sm:$0xff] }
 0x174   :  { %1514 = vmatpush1.msra.mxu1 %v1378_v47  ;;  %1438 = vmatprep.subr.mxu0 %v1313_v48  ;;  %v1411_v46 = vld [vmem:[#allocation8 + $0x3c8] sm:$0xff]  ;;  %v2095_v47 = vshrl.u32 %v646_v38, 7  ;;  %v1346_v48 = vld [vmem:[#allocation8 + $0x1c0] sm:$0xff] }
 0x175   :  { %1515 = vmatprep.subr.mxu1 %v1377_v49  ;;  %1439 = vmatpush1.msra.mxu0 %v1312_v50  ;;  %v1410_v49 = vld [vmem:[#allocation8 + $0x3c0] sm:$0xff]  ;;  %v1345_v50 = vld [vmem:[#allocation8 + $0x1b8] sm:$0xff]  ;;  %v1327_v38 = vld [vmem:[#allocation8 + $0x128] sm:$0xff] }
 0x176   :  { %1516 = vmatpush1.msra.mxu1 %v1376_v51  ;;  %1440 = vmatprep.subr.mxu0 %v1311_v52  ;;  %v1409_v51 = vld [vmem:[#allocation8 + $0x3b8] sm:$0xff]  ;;  %v1344_v52 = vld [vmem:[#allocation8 + $0x1b0] sm:$0xff] }
 0x177   :  { %1517 = vmatprep.subr.mxu1 %v1375_v53  ;;  %1441 = vmatpush1.msra.mxu0 %v1310_v54  ;;  %v1408_v53 = vld [vmem:[#allocation8 + $0x3b0] sm:$0xff]  ;;  %v732_v54 = vpop.f32.mrf.mxu0 }
 0x178   :  { %1518 = vmatpush1.msra.mxu1 %v1374_v55  ;;  %1442 = vmatprep.subr.mxu0 %v1309_v56  ;;  %v1343_v55 = vld [vmem:[#allocation8 + $0x1a8] sm:$0xff] }
 0x179   :  { %1519 = vmatprep.subr.mxu1 %v1373_v57  ;;  %1443 = vmatpush1.msra.mxu0 %v1308_v58  ;;  %v1407_v56 = vld [vmem:[#allocation8 + $0x3a8] sm:$0xff]  ;;  %v648_v57 = vsub.s32 0, %v2095_v47  ;;  %v1342_v58 = vld [vmem:[#allocation8 + $0x1a0] sm:$0xff] }
 0x17a   :  { %1520 = vmatpush1.msra.mxu1 %v1372_v59  ;;  %1444 = vmatprep.subr.mxu0 %v1307_v60  ;;  %v1406_v59 = vld [vmem:[#allocation8 + $0x3a0] sm:$0xff]  ;;  %v2098_v60 = vld [vmem:[#allocation7] sm:$0xf] }
 0x17b   :  { %1521 = vmatprep.subr.mxu1 %v1371_v61  ;;  %1445 = vmatpush1.msra.mxu0 %v1306_v62  ;;  %v652_v61 = vsub.s32 1, %v2095_v47  ;;  %v1341_v62 = vld [vmem:[#allocation8 + $0x198] sm:$0xff] }
 0x17c   :  { %1522 = vmatpush1.msra.mxu1 %v1370_v63  ;;  %1446 = vmatprep.subr.mxu0 %v1305_v0  ;;  %v1405_v63 = vld [vmem:[#allocation8 + $0x398] sm:$0xff]  ;;  %v809_v0 = vpop.f32.mrf.mxu1 }
 0x17d   :  { %1523 = vmatprep.subr.mxu1 %v1369_v1  ;;  %1447 = vmatpush1.msra.mxu0 %v1304_v2  ;;  %v1340_v1 = vld [vmem:[#allocation8 + $0x190] sm:$0xff] }
 0x17e   :  { %1524 = vmatpush1.msra.mxu1 %v1368_v3  ;;  %1448 = vmatprep.subr.mxu0 %v1303_v4  ;;  %v1404_v2 = vld [vmem:[#allocation8 + $0x390] sm:$0xff]  ;;  %v734_v3 = vpop.f32.mrf.mxu0  ;;  %v1339_v4 = vld [vmem:[#allocation8 + $0x188] sm:$0xff] }
 0x17f   :  { %1525 = vmatprep.subr.mxu1 %v1367_v5  ;;  %1449 = vmatpush1.msra.mxu0 %v1302_v6  ;;  %v1403_v5 = vld [vmem:[#allocation8 + $0x388] sm:$0xff]  ;;  %v649_v6 = vrot.slane %v2098_v60, %v648_v57 }
 0x180   :  { %1526 = vmatpush1.msra.mxu1 %v1366_v7  ;;  %1450 = vmatprep.subr.mxu0 %v1301_v8  ;;  %v1338_v7 = vld [vmem:[#allocation8 + $0x180] sm:$0xff] }
 0x181   :  { %1527 = vmatprep.subr.mxu1 %v1365_v9  ;;  %1451 = vmatpush1.msra.mxu0 %v1300_v10  ;;  %v1402_v8 = vld [vmem:[#allocation8 + $0x380] sm:$0xff]  ;;  %v653_v9 = vrot.slane %v2098_v60, %v652_v61  ;;  %v1337_v10 = vld [vmem:[#allocation8 + $0x178] sm:$0xff] }
 0x182   :  { %1528 = vmatpush1.msra.mxu1 %v1364_v11  ;;  %1452 = vmatprep.subr.mxu0 %v1299_v12  ;;  %v811_v12 = vpop.f32.mrf.mxu1 }
 0x183   :  { %1529 = vmatprep.subr.mxu1 %v1363_v13  ;;  %1453 = vmatpush1.msra.mxu0 %v1298_v14  ;;  %v1336_v13 = vld [vmem:[#allocation8 + $0x170] sm:$0xff]  ;;  %v1335_v14 = vld [vmem:[#allocation8 + $0x168] sm:$0xff] }
 0x184   :  { %1530 = vmatpush1.msra.mxu1 %v1362_v15  ;;  %1454 = vmatprep.subr.mxu0 %v1297_v16  ;;  %v733_v15 = vadd.f32 %v732_v54, %v649_v6  ;;  %v1396_v54 = vld [vmem:[#allocation8 + $0x350] sm:$0xff] }
 0x185   :  { %1531 = vmatprep.subr.mxu1 %v1361_v17  ;;  %1455 = vmatpush1.msra.mxu0 %v1296_v18  ;;  %v1334_v18 = vld [vmem:[#allocation8 + $0x160] sm:$0xff] }
 0x186   :  { %1532 = vmatpush1.msra.mxu1 %v1360_v19  ;;  %1456 = vmatprep.subr.mxu0 %v1295_v20  ;;  %v735_v19 = vadd.f32 %v734_v3, %v653_v9  ;;  %v1333_v20 = vld [vmem:[#allocation8 + $0x158] sm:$0xff]  ;;  %v1392_v3 = vld [vmem:[#allocation8 + $0x330] sm:$0xff] }
 0x187   :  { %1533 = vmatprep.subr.mxu1 %v1359_v21  ;;  %1457 = vmatpush1.msra.mxu0 %v1294_v22  ;;  %v1332_v22 = vld [vmem:[#allocation8 + $0x150] sm:$0xff] }
 0x188   :  { %1534 = vmatpush1.msra.mxu1 %v1358_v23  ;;  %1458 = vmatprep.subr.mxu0 %v1293_v24  ;;  %v1331_v23 = vld [vmem:[#allocation8 + $0x148] sm:$0xff]  ;;  %v810_v24 = vadd.f32 %v809_v0, %v733_v15  ;;  %v1615_v15 = vld [vmem:[#allocation11 + $0xf8] sm:$0xff] }
 0x189   :  { %1535 = vmatprep.subr.mxu1 %v1357_v25  ;;  %1459 = vmatpush1.msra.mxu0 %v1292_v26  ;;  %v1330_v26 = vld [vmem:[#allocation8 + $0x140] sm:$0xff] }
 0x18a   :  { %1536 = vmatpush1.msra.mxu1 %v1356_v27  ;;  %1460 = vmatprep.subr.mxu0 %v1291_v28  ;;  %v812_v27 = vadd.f32 %v811_v12, %v735_v19  ;;  %v1329_v28 = vld [vmem:[#allocation8 + $0x138] sm:$0xff]  ;;  %v2114_v19 = vld [vmem:[#allocation11 + $0xe8] sm:$0xff] }
 0x18b   :  { %1537 = vmatprep.subr.mxu1 %v1355_v29  ;;  %1461 = vmatpush1.msra.mxu0 %v1290_v30  ;;  %v1401_v29 = vld [vmem:[#allocation8 + $0x378] sm:$0xff]  ;;  %v1400_v30 = vld [vmem:[#allocation8 + $0x370] sm:$0xff] }
 0x18c   :  { %1538 = vmatpush1.msra.mxu1 %v1354_v31  ;;  %1462 = vmatprep.subr.mxu0 %v1353_v32 }
 0x18d   :  { %1539 = vmatprep.subr.mxu1 %v1417_v33  ;;  %1463 = vmatpush2.msra.mxu0 %v1352_v34 }
 0x18e   :  { %1540 = vmatpush2.msra.mxu1 %v1416_v35  ;;  %1464 = vmatprep.subr.mxu0 %v1351_v36  ;;  %v1328_v35 = vld [vmem:[#allocation8 + $0x130] sm:$0xff] }
 0x18f   :  { %1541 = vmatprep.subr.mxu1 %v1415_v37  ;;  %1465 = vmatpush2.msra.mxu0 %v1350_v39 }
 0x190   :  { %1542 = vmatpush2.msra.mxu1 %v1414_v40  ;;  %1466 = vmatprep.subr.mxu0 %v1349_v41  ;;  %v1326_v40 = vld [vmem:[#allocation8 + $0x120] sm:$0xff]  ;;  %v1399_v41 = vld [vmem:[#allocation8 + $0x368] sm:$0xff] }
 0x191   :  { %1543 = vmatprep.subr.mxu1 %v1413_v42  ;;  %1467 = vmatpush2.msra.mxu0 %v1348_v43  ;;  %v1325_v43 = vld [vmem:[#allocation8 + $0x118] sm:$0xff] }
 0x192   :  { %1544 = vmatpush2.msra.mxu1 %v1412_v44  ;;  %1468 = vmatprep.subr.mxu0 %v1347_v45  ;;  %v1398_v44 = vld [vmem:[#allocation8 + $0x360] sm:$0xff] }
 0x193   :  { %1545 = vmatprep.subr.mxu1 %v1411_v46  ;;  %1469 = vmatpush2.msra.mxu0 %v1346_v48 }
 0x194   :  { %1546 = vmatpush2.msra.mxu1 %v1410_v49  ;;  %1470 = vmatprep.subr.mxu0 %v1345_v50  ;;  %v1324_v49 = vld [vmem:[#allocation8 + $0x110] sm:$0xff]  ;;  %v1397_v50 = vld [vmem:[#allocation8 + $0x358] sm:$0xff] }
 0x195   :  { %1547 = vmatprep.subr.mxu1 %v1409_v51  ;;  %1471 = vmatpush2.msra.mxu0 %v1344_v52 }
 0x196   :  { %1548 = vmatpush2.msra.mxu1 %v1408_v53  ;;  %1472 = vmatprep.subr.mxu0 %v1343_v55  ;;  %v1323_v53 = vld [vmem:[#allocation8 + $0x108] sm:$0xff] }
 0x197   :  { %1549 = vmatprep.subr.mxu1 %v1407_v56  ;;  %1473 = vmatpush2.msra.mxu0 %v1342_v58  ;;  %v1322_v58 = vld [vmem:[#allocation8 + $0x100] sm:$0xff] }
 0x198   :  { %1550 = vmatpush2.msra.mxu1 %v1406_v59  ;;  %1474 = vmatprep.subr.mxu0 %v1341_v62  ;;  %v1395_v59 = vld [vmem:[#allocation8 + $0x348] sm:$0xff] }
 0x199   :  { %1551 = vmatprep.subr.mxu1 %v1405_v63  ;;  %1475 = vmatpush2.msra.mxu0 %v1340_v1  ;;  %v1394_v63 = vld [vmem:[#allocation8 + $0x340] sm:$0xff] }
 0x19a   :  { %v738_v11 = vpop.f32.mrf.mxu0  ;;  %1552 = vmatpush2.msra.mxu1 %v1404_v2  ;;  %1476 = vmatprep.subr.mxu0 %v1339_v4  ;;  %v1393_v2 = vld [vmem:[#allocation8 + $0x338] sm:$0xff] }
 0x19b   :  { %1553 = vmatprep.subr.mxu1 %v1403_v5  ;;  %1477 = vmatpush2.msra.mxu0 %v1338_v7  ;;  %v739_v31 = vadd.f32 %v738_v11, %v649_v6  ;;  %v1391_v6 = vld [vmem:[#allocation8 + $0x328] sm:$0xff]  ;;  %v1388_v11 = vld [vmem:[#allocation8 + $0x310] sm:$0xff] }
 0x19c   :  { %1554 = vmatpush2.msra.mxu1 %v1402_v8  ;;  %1478 = vmatprep.subr.mxu0 %v1337_v10  ;;  %v740_v16 = vpop.f32.mrf.mxu0  ;;  %v1390_v8 = vld [vmem:[#allocation8 + $0x320] sm:$0xff] }
 0x19d   :  { %v815_v17 = vpop.f32.mrf.mxu1  ;;  %1479 = vmatpush2.msra.mxu0 %v1336_v13  ;;  %1555 = vmatprep.subr.mxu1 %v1401_v29  ;;  %v741_v36 = vadd.f32 %v740_v16, %v653_v9  ;;  %v1389_v9 = vld [vmem:[#allocation8 + $0x318] sm:$0xff]  ;;  %v1387_v13 = vld [vmem:[#allocation8 + $0x308] sm:$0xff] }
 0x19e   :  { %1480 = vmatprep.subr.mxu0 %v1335_v14  ;;  %1556 = vmatpush2.msra.mxu1 %v1400_v30  ;;  %v816_v45 = vadd.f32 %v815_v17, %v739_v31  ;;  %v1386_v14 = vld [vmem:[#allocation8 + $0x300] sm:$0xff]  ;;  %v2109_v17 = vld [vmem:[#allocation11 + $0xf0] sm:$0xff] }
 0x19f   :  { %v817_v21 = vpop.f32.mrf.mxu1  ;;  %1481 = vmatpush2.msra.mxu0 %v1334_v18  ;;  %1557 = vmatprep.subr.mxu1 %v1399_v41  ;;  %v2107_v16 = vld [vmem:[#allocation11 + $0x78] sm:$0xff]  ;;  %v2111_v18 = vld [vmem:[#allocation11 + $0x70] sm:$0xff]  ;;  %v2144_v29 = vld [vmem:[#allocation11 + $0xc0] sm:$0xff]  ;;  %v656_v41 = vsub.s32 2, %v2095_v47 }
 0x1a0   :  { %1482 = vmatprep.subr.mxu0 %v1333_v20  ;;  %1558 = vmatpush2.msra.mxu1 %v1398_v44  ;;  %v818_v51 = vadd.f32 %v817_v21, %v741_v36  ;;  %v2117_v20 = vld [vmem:[#allocation11 + $0x68] sm:$0xff]  ;;  %v2120_v21 = vld [vmem:[#allocation11 + $0xe0] sm:$0xff]  ;;  %v2150_v31 = vld [vmem:[#allocation11 + $0xb8] sm:$0xff]  ;;  %v660_v44 = vsub.s32 3, %v2095_v47 }
 0x1a1   :  { %v886_v25 = vpop.f32.mrf.mxu0  ;;  %1483 = vmatpush2.msra.mxu0 %v1332_v22  ;;  %1559 = vmatprep.subr.mxu1 %v1397_v50  ;;  %v2123_v22 = vld [vmem:[#allocation11 + $0x60] sm:$0xff]  ;;  %v2165_v36 = vld [vmem:[#allocation11 + $0x28] sm:$0xff] }
 0x1a2   :  { %v887_v32 = vadd.f32 %v886_v25, %v810_v24  ;;  %1484 = vmatprep.subr.mxu0 %v1331_v23  ;;  %1560 = vmatpush2.msra.mxu1 %v1396_v54  ;;  %v2126_v23 = vld [vmem:[#allocation11 + $0xd8] sm:$0xff]  ;;  %v2132_v25 = vld [vmem:[#allocation11 + $0xd0] sm:$0xff]  ;;  %v2147_v30 = vld [vmem:[#allocation11 + $0x40] sm:$0xff] }
 0x1a3   :  { %v963_v33 = vpop.f32.mrf.mxu1  ;;  %v888_v34 = vpop.f32.mrf.mxu0  ;;  %1485 = vmatpush2.msra.mxu0 %v1330_v26  ;;  %1561 = vmatprep.subr.mxu1 %v1395_v59  ;;  %v2129_v24 = vld [vmem:[#allocation11 + $0x58] sm:$0xff]  ;;  %v2135_v26 = vld [vmem:[#allocation11 + $0x50] sm:$0xff] }
 0x1a4   :  { %v889_v37 = vadd.f32 %v888_v34, %v812_v27  ;;  %1486 = vmatprep.subr.mxu0 %v1329_v28  ;;  %v964_v46 = vadd.f32 %v963_v33, %v887_v32  ;;  %1562 = vmatpush2.msra.mxu1 %v1394_v63  ;;  %v2138_v27 = vld [vmem:[#allocation11 + $0xc8] sm:$0xff]  ;;  %v2153_v32 = vld [vmem:[#allocation11 + $0x38] sm:$0xff]  ;;  %v2156_v33 = vld [vmem:[#allocation11 + $0xb0] sm:$0xff] }
 0x1a5   :  { %v965_v39 = vpop.f32.mrf.mxu1  ;;  %1487 = vmatpush2.msra.mxu0 %v1328_v35  ;;  %1563 = vmatprep.subr.mxu1 %v1393_v2  ;;  %v2141_v28 = vld [vmem:[#allocation11 + $0x48] sm:$0xff]  ;;  %v2159_v34 = vld [vmem:[#allocation11 + $0x30] sm:$0xff] }
 0x1a6   :  { %v966_v42 = vadd.f32 %v965_v39, %v889_v37  ;;  %1488 = vmatprep.subr.mxu0 %v1327_v38  ;;  %v1282_v0 = vmax.f32 %v964_v46, 0.0  ;;  %1564 = vmatpush2.msra.mxu1 %v1392_v3  ;;  %v2162_v35 = vld [vmem:[#allocation11 + $0xa8] sm:$0xff]  ;;  %v2168_v37 = vld [vmem:[#allocation11 + $0xa0] sm:$0xff]  ;;  %v2174_v39 = vld [vmem:[#allocation11 + $0x98] sm:$0xff] }
 0x1a7   :  { %v892_v48 = vpop.f32.mrf.mxu0  ;;  %1489 = vmatpush2.msra.mxu0 %v1326_v40  ;;  %1565 = vmatprep.subr.mxu1 %v1391_v6  ;;  %v2171_v38 = vld [vmem:[#allocation11 + $0x20] sm:$0xff]  ;;  %v2177_v40 = vld [vmem:[#allocation11 + $0x18] sm:$0xff] }
 0x1a8   :  { %v1283_v52 = vmax.f32 %v966_v42, 0.0  ;;  %v893_v55 = vadd.f32 %v892_v48, %v816_v45  ;;  %1490 = vmatprep.subr.mxu0 %v1325_v43  ;;  %1566 = vmatpush2.msra.mxu1 %v1390_v8  ;;  %v657_v45 = vrot.slane %v2098_v60, %v656_v41  ;;  %v661_v48 = vrot.slane %v2098_v60, %v660_v44 }
 0x1a9   :  { %v894_v56 = vpop.f32.mrf.mxu0  ;;  %1491 = vmatpush2.msra.mxu0 %v1324_v49  ;;  %1567 = vmatprep.subr.mxu1 %v1389_v9 }
 0x1aa   :  { %v895_v62 = vadd.f32 %v894_v56, %v818_v51  ;;  %1494 = vmatprep.mubr.f32.mxu0 %v1283_v52  ;;  %v969_v1 = vpop.f32.mrf.mxu1  ;;  %1492 = vmatprep.subr.mxu0 %v1323_v53 }
 0x1ab   :  { %1493 = vmatpush2.msra.mxu0 %v1322_v58  ;;  %v970_v4 = vadd.f32 %v969_v1, %v893_v55  ;;  %1568 = vmatpush2.msra.mxu1 %v1388_v11 }
 0x1ac   :  { %v971_v5 = vpop.f32.mrf.mxu1  ;;  %1495 = vmatmul.mubr.f32.vlgmr.msra.gmra.mxu0 %v1282_v0  ;;  %1569 = vmatprep.subr.mxu1 %v1387_v13 }
 0x1ad   :  { %v972_v7 = vadd.f32 %v971_v5, %v895_v62  ;;  %v1286_v12 = vmax.f32 %v970_v4, 0.0  ;;  %1570 = vmatpush2.msra.mxu1 %v1386_v14  ;;  %1735 = vmatprep.subr.mxu0 %v1615_v15 }
 0x1ae   :  { %1773 = vmatprep.subr.mxu1 %v1615_v15  ;;  %1736 = vmatpush3.msra.mxu0 %v2107_v16 }
 0x1af   :  { %v1287_v10 = vmax.f32 %v972_v7, 0.0  ;;  %1737 = vmatprep.subr.mxu0 %v2109_v17 }
 0x1b0   :  { %1738 = vmatpush3.msra.mxu0 %v2111_v18 }
 0x1b1   :  { %1500 = vmatprep.mubr.f32.mxu0 %v1287_v10  ;;  %1739 = vmatprep.subr.mxu0 %v2114_v19 }
 0x1b2   :  { %1501 = vmatmul.mubr.f32.gmra.mxu0 %v1286_v12 }
 0x1b3   :  { %1740 = vmatpush3.msra.mxu0 %v2117_v20 }
 0x1b4   :  { %1741 = vmatprep.subr.mxu0 %v2120_v21 }
 0x1b5   :  { %1742 = vmatpush3.msra.mxu0 %v2123_v22 }
 0x1b6   :  { %1743 = vmatprep.subr.mxu0 %v2126_v23 }
 0x1b7   :  { %1744 = vmatpush3.msra.mxu0 %v2129_v24 }
 0x1b8   :  { %1745 = vmatprep.subr.mxu0 %v2132_v25 }
 0x1b9   :  { %1746 = vmatpush3.msra.mxu0 %v2135_v26 }
 0x1ba   :  { %1747 = vmatprep.subr.mxu0 %v2138_v27 }
 0x1bb   :  { %1748 = vmatpush3.msra.mxu0 %v2141_v28 }
 0x1bc   :  { %1749 = vmatprep.subr.mxu0 %v2144_v29 }
 0x1bd   :  { %1750 = vmatpush3.msra.mxu0 %v2147_v30 }
 0x1be   :  { %1751 = vmatprep.subr.mxu0 %v2150_v31 }
 0x1bf   :  { %1752 = vmatpush3.msra.mxu0 %v2153_v32 }
 0x1c0   :  { %1753 = vmatprep.subr.mxu0 %v2156_v33 }
 0x1c1   :  { %1754 = vmatpush3.msra.mxu0 %v2159_v34 }
 0x1c2   :  { %1755 = vmatprep.subr.mxu0 %v2162_v35 }
 0x1c3   :  { %1756 = vmatpush3.msra.mxu0 %v2165_v36 }
 0x1c4   :  { %1757 = vmatprep.subr.mxu0 %v2168_v37 }
 0x1c5   :  { %1758 = vmatpush3.msra.mxu0 %v2171_v38 }
 0x1c6   :  { %1759 = vmatprep.subr.mxu0 %v2174_v39 }
 0x1c7   :  { %1760 = vmatpush3.msra.mxu0 %v2177_v40 }
 0x1e5   :  { %v1040_v42 = vpop.f32.mrf.mxu0 }
 0x1e6   :  { %v1041_v51 = vadd.f32 %v1040_v42, %v657_v45 }
 0x1e7   :  { %v1117_v43 = vpop.f32.mrf.mxu1  ;;  %v1042_v46 = vpop.f32.mrf.mxu0 }
 0x1e8   :  { %v1043_v53 = vadd.f32 %v1042_v46, %v661_v48  ;;  %v1118_v56 = vadd.f32 %v1117_v43, %v1041_v51 }
 0x1e9   :  { %v1119_v49 = vpop.f32.mrf.mxu1 }
 0x1ea   :  { %v1120_v63 = vadd.f32 %v1119_v49, %v1043_v53 }
 0x221   :  { %v1046_v50 = vpop.f32.mrf.mxu0 }
 0x222   :  { %v1047_v58 = vadd.f32 %v1046_v50, %v657_v45 }
 0x223   :  { %v1048_v55 = vpop.f32.mrf.mxu0 }
 0x224   :  { %v1123_v52 = vpop.f32.mrf.mxu1  ;;  %v1049_v0 = vadd.f32 %v1048_v55, %v661_v48 }
 0x225   :  { %v1124_v4 = vadd.f32 %v1123_v52, %v1047_v58 }
 0x226   :  { %v1125_v54 = vpop.f32.mrf.mxu1 }
 0x227   :  { %v1126_v8 = vadd.f32 %v1125_v54, %v1049_v0 }
 0x229   :  { %v1194_v59 = vpop.f32.mrf.mxu0 }
 0x22a   :  { %v1271_v62 = vpop.f32.mrf.mxu1  ;;  %v1195_v1 = vadd.f32 %v1194_v59, %v1118_v56 }
 0x22b   :  { %v1196_v2 = vpop.f32.mrf.mxu0 }
 0x22c   :  { %v1273_v3 = vpop.f32.mrf.mxu1  ;;  %v1197_v5 = vadd.f32 %v1196_v2, %v1120_v63  ;;  %v1272_v6 = vadd.f32 %v1271_v62, %v1195_v1 }
 0x22d   :  { %v1200_v60 = vpop.f32.mrf.mxu0 }
 0x22e   :  { %v1277_v7 = vpop.f32.mrf.mxu1  ;;  %v1274_v9 = vadd.f32 %v1273_v3, %v1197_v5  ;;  %v1201_v10 = vadd.f32 %v1200_v60, %v1124_v4  ;;  %v1284_v14 = vmax.f32 %v1272_v6, 0.0 }
 0x22f   :  { %v1202_v11 = vpop.f32.mrf.mxu0 }
 0x230   :  { %v1285_v12 = vmax.f32 %v1274_v9, 0.0  ;;  %v1203_v13 = vadd.f32 %v1202_v11, %v1126_v8  ;;  %v1278_v15 = vadd.f32 %v1277_v7, %v1201_v10  ;;  %v1279_v41 = vpop.f32.mrf.mxu1 }
 0x232   :  { %v1280_v42 = vadd.f32 %v1279_v41, %v1203_v13  ;;  %1571 = vmatprep.mubr.f32.mxu1 %v1285_v12  ;;  %v1288_v44 = vmax.f32 %v1278_v15, 0.0 }
 0x233   :  { %1572 = vmatmul.mubr.f32.vlgmr.msra.gmra.mxu1 %v1284_v14 }
 0x234   :  { %v1289_v43 = vmax.f32 %v1280_v42, 0.0  ;;  %1789 = vmatpush3.msra.mxu1 %v2107_v16  ;;  %v1602_v16 = vld [vmem:[#allocation11 + $0x90] sm:$0xff] }
 0x235   :  { %1774 = vmatprep.subr.mxu1 %v2109_v17  ;;  %1761 = vmatprep.subr.mxu0 %v1602_v16  ;;  %v1586_v17 = vld [vmem:[#allocation11 + $0x10] sm:$0xff] }
 0x236   :  { %1577 = vmatprep.mubr.f32.mxu1 %v1289_v43  ;;  %1790 = vmatpush3.msra.mxu1 %v2111_v18  ;;  %v1601_v18 = vld [vmem:[#allocation11 + $0x88] sm:$0xff] }
 0x237   :  { %1578 = vmatmul.mubr.f32.gmra.mxu1 %v1288_v44  ;;  %1775 = vmatprep.subr.mxu1 %v2114_v19  ;;  %v1585_v19 = vld [vmem:[#allocation11 + $0x8] sm:$0xff] }
 0x238   :  { %1791 = vmatpush3.msra.mxu1 %v2117_v20  ;;  %1762 = vmatpush3.msra.mxu0 %v1586_v17  ;;  %v1600_v20 = vld [vmem:[#allocation11 + $0x80] sm:$0xff] }
 0x239   :  { %1776 = vmatprep.subr.mxu1 %v2120_v21  ;;  %1763 = vmatprep.subr.mxu0 %v1601_v18  ;;  %v1584_v21 = vld [vmem:[#allocation11] sm:$0xff] }
 0x23a   :  { %1792 = vmatpush3.msra.mxu1 %v2123_v22  ;;  %1764 = vmatpush3.msra.mxu0 %v1585_v19 }
 0x23b   :  { %1777 = vmatprep.subr.mxu1 %v2126_v23  ;;  %1765 = vmatprep.subr.mxu0 %v1600_v20 }
 0x23c   :  { %1793 = vmatpush3.msra.mxu1 %v2129_v24  ;;  %1766 = vmatpush3.msra.mxu0 %v1584_v21  ;;  %v1418_v24 = vld [vmem:[#allocation10] sm:$0x3] }
 0x23d   :  { %1778 = vmatprep.subr.mxu1 %v2132_v25  ;;  %v1427_v25 = vrot.slane %v1418_v24, %v652_v61 }
 0x23e   :  { %1794 = vmatpush3.msra.mxu1 %v2135_v26  ;;  %v1423_v26 = vrot.slane %v1418_v24, %v648_v57  ;;  %v1732_v57 = vld [vmem:[#allocation13] ss:$0 sm:$0xff] }
 0x23f   :  { %1779 = vmatprep.subr.mxu1 %v2138_v27 }
 0x240   :  { %1795 = vmatpush3.msra.mxu1 %v2141_v28 }
 0x241   :  { %1780 = vmatprep.subr.mxu1 %v2144_v29 }
 0x242   :  { %1796 = vmatpush3.msra.mxu1 %v2147_v30 }
 0x243   :  { %1781 = vmatprep.subr.mxu1 %v2150_v31 }
 0x244   :  { %1797 = vmatpush3.msra.mxu1 %v2153_v32 }
 0x245   :  { %1782 = vmatprep.subr.mxu1 %v2156_v33 }
 0x246   :  { %1798 = vmatpush3.msra.mxu1 %v2159_v34 }
 0x247   :  { %1783 = vmatprep.subr.mxu1 %v2162_v35 }
 0x248   :  { %1799 = vmatpush3.msra.mxu1 %v2165_v36 }
 0x249   :  { %1784 = vmatprep.subr.mxu1 %v2168_v37 }
 0x24a   :  { %1800 = vmatpush3.msra.mxu1 %v2171_v38 }
 0x24b   :  { %1785 = vmatprep.subr.mxu1 %v2174_v39 }
 0x24c   :  { %1801 = vmatpush3.msra.mxu1 %v2177_v40 }
 0x24d   :  { %1786 = vmatprep.subr.mxu1 %v1602_v16 }
 0x24e   :  { %1802 = vmatpush3.msra.mxu1 %v1586_v17 }
 0x24f   :  { %1787 = vmatprep.subr.mxu1 %v1601_v18 }
 0x250   :  { %1803 = vmatpush3.msra.mxu1 %v1585_v19 }
 0x251   :  { %1788 = vmatprep.subr.mxu1 %v1600_v20 }
 0x252   :  { %1804 = vmatpush3.msra.mxu1 %v1584_v21 }
 0x26c   :  { %v1496_v22 = vpop.f32.mrf.mxu0 }
 0x26d   :  { %v1497_v30 = vadd.f32 %v1496_v22, %v1423_v26 }
 0x26e   :  { %v1498_v23 = vpop.f32.mrf.mxu0 }
 0x26f   :  { %v1499_v29 = vadd.f32 %v1498_v23, %v1427_v25 }
 0x272   :  { %v1502_v27 = vpop.f32.mrf.mxu0 }
 0x273   :  { %v1503_v37 = vadd.f32 %v1502_v27, %v1423_v26 }
 0x274   :  { %v1504_v31 = vpop.f32.mrf.mxu0 }
 0x275   :  { %v1505_v36 = vadd.f32 %v1504_v31, %v1427_v25 }
 0x2f3   :  { %v1573_v28 = vpop.f32.mrf.mxu1 }
 0x2f4   :  { %v1574_v34 = vadd.f32 %v1573_v28, %v1497_v30 }
 0x2f5   :  { %v1575_v32 = vpop.f32.mrf.mxu1 }
 0x2f6   :  { %v1576_v33 = vadd.f32 %v1575_v32, %v1499_v29 }
 0x2f7   :  { %v1579_v35 = vpop.f32.mrf.mxu1 }
 0x2f8   :  { %1687 = vmatprep.mubr.f32.mxu0 %v1576_v33  ;;  %v1580_v40 = vadd.f32 %v1579_v35, %v1503_v37 }
 0x2f9   :  { %v1581_v38 = vpop.f32.mrf.mxu1  ;;  %1688 = vmatmul.mubr.f32.vlgmr.msra.gmra.mxu0 %v1574_v34 }
 0x2fa   :  { %v1582_v39 = vadd.f32 %v1581_v38, %v1505_v36 }
 0x2fc   :  { %1692 = vmatprep.mubr.f32.mxu1 %v1582_v39 }
 0x2fd   :  { %1693 = vmatmul.mubr.f32.vlgmr.msra.gmra.mxu1 %v1580_v40 }
 0x3b9   :  { %v1767_v47 = vpop.f32.mrf.mxu0 }
 0x3bb   :  { %v1768_v61 = vpop.f32.mrf.mxu0 }
 0x3bc   :  { %v1769_v45 = vadd.f32 %v1768_v61, %v1767_v47 }
 0x3bd   :  { %v1770_v46 = vpop.f32.mrf.mxu1 }
 0x3be   :  { %v1690_v48 = vadd.f32 %v1769_v45, %v1732_v57 }
 0x3bf   :  { %v1771_v49 = vpop.f32.mrf.mxu1 }
 0x3c0   :  { %v1733_v50 = vmul.f32 -1.442695, %v1690_v48  ;;  %v1772_v51 = vadd.f32 %v1771_v49, %v1770_v46 }
 0x3c2   :  { %1821 = vpow2.f32 %v1733_v50  ;;  %v1695_v52 = vadd.f32 %v1772_v51, %v1732_v57 }
 0x3c4   :  { %v1734_v53 = vmul.f32 -1.442695, %v1695_v52 }
 0x3c6   :  { %1823 = vpow2.f32 %v1734_v53 }
 0x3cf   :  { %v1822_v54 = vpop.eup %1821 }
 0x3d0   :  { %v1704_v55 = vadd.f32 1.0, %v1822_v54 }
 0x3d2   :  { %1825 = vrcp.f32 %v1704_v55 }
 0x3d3   :  { %v1824_v56 = vpop.eup %1823 }
 0x3d4   :  { %v1705_v58 = vadd.f32 1.0, %v1824_v56 }
 0x3d6   :  { %1827 = vrcp.f32 %v1705_v58 }
 0x3df   :  { %v1826_v59 = vpop.eup %1825 }
 0x3e0   :  { %1710 = vst [vmem:[#allocation14] sm:$0xff] %v1826_v59 }
 0x3e3   :  { %v1828_v62 = vpop.eup %1827 }
 0x3e4   :  { %1711 = vst [vmem:[#allocation14 + $0x8] sm:$0xff] %v1828_v62 }
 0x3e5   :  { %1996 = shalt.err (!%p1993_p11)
}
 0x3e6   :  { %1723 = dma.vmem_to_hbm [thread:$0]  %s1718_s6, 256, %s2228_s7, [#allocation4], %s2022_s17, %s2022_s17, %s2023_s18  }
 0x3e7   :  { %2013 = dma.done.wait [#allocation4], 256  }
 0x3e8   :  { %2014 = vsyncadd [#allocation4], 4294967040 }
 0x3e9   :  { %1727 = vsyncpa [#allocation3], 1 }
 0x3ea   :  { %1728 = vsyncpa [#allocation6], 1 }
 0x3eb   :  { %1729 = vsyncpa [#allocation9], 1 }
 0x3ec   :  { %1730 = vsyncpa [#allocation12], 1 }
 0x3ed   :  { %1731 = vsyncpa [#allocation4], 1 }

</bundles_post_ra>
